<compile_context>
chip_gen: v5e
topology: v5e:2x2
jax: 0.10.0
libtpu: 0.0.40
codegen_flags: <defaults>
</compile_context>

<pallas_src>
import functools

import jax
import jax.numpy as jnp
from jax import lax
from jax.experimental import pallas as pl
from jax.experimental.pallas import tpu as pltpu


def _trans_conv_kernel(x_ref, w_ref, b_ref, o_ref, *, KH, OW, TH):
    """One (TH rows x OW cols) output tile of one batch element.

    x_ref: (1, HP*OW, KW*Cin)  kw-unfolded, zero-padded input (whole image,
                               resident per batch element), compute dtype.
    w_ref: (KH, KW*Cin, Cpad)  spatially flipped weight, Cout zero-padded.
    b_ref: (1, Cpad)           f32 bias (zero-padded).
    o_ref: (1, TH*OW, Cpad)    output rows [t*TH, (t+1)*TH) of batch n.
    """
    m = TH * OW
    cpad = o_ref.shape[-1]
    row0 = pl.program_id(1) * m          # flattened (h*OW) offset of this tile

    def tap(kh, acc):
        # Output rows [t*TH, t*TH+TH) at tap kh read padded-input rows
        # [t*TH+kh, t*TH+kh+TH); kw is already folded into the lane axis, so
        # the patch is one contiguous (TH*OW, KW*Cin) slab.
        start = pl.multiple_of(row0 + kh * OW, OW)
        patch = x_ref[0, pl.ds(start, m), :]
        return acc + jnp.dot(patch, w_ref[kh],
                             preferred_element_type=jnp.float32)

    acc = lax.fori_loop(0, KH, tap, jnp.zeros((m, cpad), jnp.float32),
                        unroll=False)
    o_ref[0, :, :] = (acc + b_ref[...]).astype(o_ref.dtype)


def _pick_row_tile(oh, ow, n_batch, max_m=256):
    """Largest divisor TH of OH with TH*OW <= max_m (<= 32 f32 acc vregs at
    Cpad=128), sublane-aligned tiles, and -- when possible -- >= 2 grid steps
    so both v7x TensorCores get work."""
    divisors = [d for d in range(1, oh + 1) if oh % d == 0]
    ok = [d for d in divisors if d * ow <= max_m and (d * ow) % 8 == 0]
    if not ok:
        # TODO(synk): add a column (OW) tile for very wide / oddly sized
        # images; falling back to the full plane is correct but may spill.
        return oh
    multi_step = [d for d in ok if n_batch * (oh // d) >= 2]
    pool = multi_step if multi_step else ok
    return max(pool)


def trans_conv_forward(x_nchw, weight, bias, *, padding=(5, 5), stride=(1, 1),
                       compute_dtype=jnp.bfloat16, out_dtype=jnp.bfloat16,
                       max_row_tile_m=256):
    """ConvTranspose2d(stride=1) forward.

    x_nchw: (N, Cin, H, W).  weight: (Cin, Cout, KH, KW) (PyTorch
    ConvTranspose2d layout).  bias: (Cout,).  norm_layer=None -> Identity.
    For strict f32 parity with the PyTorch module use
    compute_dtype=out_dtype=jnp.float32 (bf16 keeps f32 accumulation and an
    f32 bias epilogue either way).
    """
    # Only the configuration the module exercises: stride 1, no dilation,
    # groups=1, output_padding=0.
    assert tuple(stride) == (1, 1), "only stride=1 is implemented"
    N, Cin, H, W = x_nchw.shape
    wcin, Cout, KH, KW = weight.shape
    assert wcin == Cin, (wcin, Cin)
    ph, pw = padding
    eph, epw = KH - 1 - ph, KW - 1 - pw
    if eph < 0 or epw < 0:
        raise NotImplementedError("padding > kernel_size - 1 is not supported")
    OH = (H - 1) - 2 * ph + KH
    OW = (W - 1) - 2 * pw + KW

    # Pad Cout up to a multiple of 128: makes the output store unmasked and
    # lane-dense.  Do not pad further (pure zero work on the MXU N axis).
    Cpad = -(-Cout // 128) * 128
    K = KW * Cin

    # --- XLA glue: NHWC + halo pad + kw-unfold (one extra compute-dtype copy
    # of the input in HBM, KW x larger; this buys the fused K=KW*Cin
    # contraction and contiguous aligned patch loads inside the kernel). ---
    x = jnp.transpose(x_nchw, (0, 2, 3, 1)).astype(compute_dtype)   # NHWC
    x = jnp.pad(x, ((0, 0), (eph, eph), (epw, epw), (0, 0)))
    HP = x.shape[1]
    # x_unf[n, h, ow, kw*Cin + c] = x_pad[n, h, ow + kw, c]
    x_unf = jnp.concatenate([x[:, :, kw:kw + OW, :] for kw in range(KW)],
                            axis=-1)
    x_unf = x_unf.reshape(N, HP * OW, K)

    # Spatially flip, reorder to (KH, KW, Cin, Cout), fuse (KW, Cin) -> K,
    # zero-pad Cout -> Cpad.
    w = jnp.transpose(jnp.flip(weight, (2, 3)), (2, 3, 0, 1)).astype(compute_dtype)
    w = w.reshape(KH, K, Cout)
    w = jnp.pad(w, ((0, 0), (0, 0), (0, Cpad - Cout)))
    b = jnp.pad(bias.astype(jnp.float32), (0, Cpad - Cout)).reshape(1, Cpad)

    TH = _pick_row_tile(OH, OW, N, max_row_tile_m)
    M = TH * OW

    # Explicit VMEM budget: double-buffered resident blocks + headroom.
    # TODO(synk): at Cin=768 the resident weight block is ~20 MB; on v7x
    # (64 MiB VMEM) add pipeline_mode=pl.Buffered(1) on the constant-index
    # x/w blocks or split kh onto an "arbitrary" grid axis with a VMEM scratch
    # accumulator (init/finalize via pl.when).
    isz = jnp.dtype(compute_dtype).itemsize
    osz = jnp.dtype(out_dtype).itemsize
    resident = 2 * (HP * OW * K * isz       # x_unf block (per batch element)
                    + KH * K * Cpad * isz   # fused weight
                    + Cpad * 4              # bias
                    + M * Cpad * osz)       # output tile
    vmem_limit = int(min(64 * 2 ** 20, max(32 * 2 ** 20, 2 * resident)))

    flops = 2 * N * OH * OW * KH * K * Cpad
    bytes_accessed = int(x_unf.size * isz + w.size * isz + b.size * 4
                         + N * OH * OW * Cpad * osz)

    kernel = functools.partial(_trans_conv_kernel, KH=KH, OW=OW, TH=TH)
    out = pl.pallas_call(
        kernel,
        out_shape=jax.ShapeDtypeStruct((N, OH * OW, Cpad), out_dtype),
        grid_spec=pltpu.PrefetchScalarGridSpec(
            num_scalar_prefetch=0,
            grid=(N, OH // TH),
            in_specs=[
                # Whole unfolded image resident per batch element; index map is
                # constant over the row-tile axis -> fetched once per n.
                pl.BlockSpec((1, HP * OW, K), lambda n, t: (n, 0, 0)),
                # Full fused weight, constant index map -> fetched once.
                pl.BlockSpec((KH, K, Cpad), lambda n, t: (0, 0, 0)),
                pl.BlockSpec((1, Cpad), lambda n, t: (0, 0)),
            ],
            out_specs=pl.BlockSpec((1, M, Cpad), lambda n, t: (n, t, 0)),
        ),
        compiler_params=pltpu.CompilerParams(
            # No carried state across either grid axis -> both parallel (lets
            # v7x shard over its 2 TensorCores; no-op on v5e/v6e).
            dimension_semantics=("parallel", "parallel"),
            vmem_limit_bytes=vmem_limit),
        cost_estimate=pl.CostEstimate(flops=flops, transcendentals=0,
                                      bytes_accessed=bytes_accessed),
    )(x_unf, w, b)

    # Metadata-only reshape, crop the Cout padding, back to NCHW.
    # TODO(synk): if downstream accepts NHWC, return the cropped NHWC tensor
    # directly and skip the transpose pass over the output.
    out = out.reshape(N, OH, OW, Cpad)[:, :, :, :Cout]
    return jnp.transpose(out, (0, 3, 1, 2))


if __name__ == "__main__":
    key = jax.random.PRNGKey(0)
    k1, k2, k3 = jax.random.split(key, 3)

    # Small shapes consistent with the module (in_c scaled down from 768,
    # out_c=20 as in the module; spatial 17 -> output 16 so row/lane tiling is
    # 8/128-friendly).
    N, Cin, Cout, H, W = 2, 64, 20, 17, 17
    KH, KW = 10, 10            # spatial part of kernel_size=(4, 10, 10)
    padding = (5, 5)           # spatial part of padding=(0, 5, 5)

    x = jax.random.normal(k1, (N, Cin, H, W), jnp.float32)
    weight = 0.1 * jax.random.normal(k2, (Cin, Cout, KH, KW), jnp.float32)
    bias = 0.1 * jax.random.normal(k3, (Cout,), jnp.float32)

    out = trans_conv_forward(x, weight, bias, padding=padding)
    out = jax.block_until_ready(out)

    # Reference: XLA correlation of the same bf16 operands with f32
    # accumulation (ConvTranspose2d(stride=1, padding=p) == valid correlation
    # of the (K-1-p)-padded input with the spatially flipped kernel).
    # TODO(synk): for strict f32 parity with the PyTorch module, call
    # trans_conv_forward(..., compute_dtype=jnp.float32, out_dtype=jnp.float32)
    # and compare against an f32 reference.
    eph, epw = KH - 1 - padding[0], KW - 1 - padding[1]
    x_nhwc = jnp.transpose(x, (0, 2, 3, 1)).astype(jnp.bfloat16)
    w_flip = jnp.transpose(jnp.flip(weight, (2, 3)), (2, 3, 0, 1)).astype(jnp.bfloat16)
    ref = lax.conv_general_dilated(
        x_nhwc, w_flip, window_strides=(1, 1),
        padding=[(eph, eph), (epw, epw)],
        dimension_numbers=("NHWC", "HWIO", "NHWC"),
        preferred_element_type=jnp.float32) + bias[None, None, None, :]
    ref = jnp.transpose(ref, (0, 3, 1, 2))

    OH = (H - 1) - 2 * padding[0] + KH
    OW = (W - 1) - 2 * padding[1] + KW
    assert out.shape == (N, Cout, OH, OW), out.shape
    out_f32 = out.astype(jnp.float32)
    err = float(jnp.max(jnp.abs(out_f32 - ref)))
    assert jnp.allclose(out_f32, ref, atol=3e-2, rtol=3e-2), err
    print("KERNEL_OK")
</pallas_src>

<mosaic_0001>
module attributes {stable_mosaic.version = 11 : i64} {
  func.func @_trans_conv_kernel(%arg0: i32, %arg1: i32, %arg2: memref<1x400x640xbf16, #tpu.memory_space<vmem>>, %arg3: memref<10x640x128xbf16, #tpu.memory_space<vmem>>, %arg4: memref<1x128xf32, #tpu.memory_space<vmem>>, %arg5: memref<1x256x128xbf16, #tpu.memory_space<vmem>>) attributes {dimension_semantics = [#tpu.dimension_semantics<parallel>, #tpu.dimension_semantics<parallel>], iteration_bounds = array<i64: 2, 1>, scalar_prefetch = 0 : i64, scratch_operands = 0 : i64, tpu.core_type = #tpu.core_type<tc>, window_params = [{transform_indices = @transform_0, window_bounds = array<i64: 1, 400, 640>}, {pipeline_mode = #tpu.pipeline_mode<synchronous>, transform_indices = @transform_1, window_bounds = array<i64: 10, 640, 128>}, {pipeline_mode = #tpu.pipeline_mode<synchronous>, transform_indices = @transform_2, window_bounds = array<i64: 1, 128>}, {transform_indices = @transform_3, window_bounds = array<i64: 1, 256, 128>}]} {
    %c256_i32 = arith.constant 256 : i32
    %0 = arith.muli %arg1, %c256_i32 : i32
    %cst = arith.constant 0.000000e+00 : f32
    %1 = vector.broadcast %cst : f32 to vector<256x128xf32>
    %c0_i32 = arith.constant 0 : i32
    %c10_i32 = arith.constant 10 : i32
    %2 = arith.addi %c0_i32, %c10_i32 : i32
    %c1_i32 = arith.constant 1 : i32
    %3 = scf.for %arg6 = %c0_i32 to %2 step %c1_i32 iter_args(%arg7 = %1) -> (vector<256x128xf32>)  : i32 {
      %c16_i32 = arith.constant 16 : i32
      %11 = arith.muli %arg6, %c16_i32 : i32
      %12 = arith.addi %0, %11 : i32
      %13 = tpu.assume_multiple %12, 16 : i32
      %c0_5 = arith.constant 0 : index
      %14 = arith.index_cast %13 : i32 to index
      %c0_6 = arith.constant 0 : index
      %15 = vector.load %arg2[%c0_5, %14, %c0_6] : memref<1x400x640xbf16, #tpu.memory_space<vmem>>, vector<1x256x640xbf16>
      %16 = vector.shape_cast %15 : vector<1x256x640xbf16> to vector<256x640xbf16>
      %17 = arith.index_cast %arg6 : i32 to index
      %c0_7 = arith.constant 0 : index
      %c0_8 = arith.constant 0 : index
      %18 = vector.load %arg3[%17, %c0_7, %c0_8] : memref<10x640x128xbf16, #tpu.memory_space<vmem>>, vector<1x640x128xbf16>
      %19 = vector.shape_cast %18 : vector<1x640x128xbf16> to vector<640x128xbf16>
      %cst_9 = arith.constant dense<0.000000e+00> : vector<256x128xf32>
      %20 = tpu.matmul %16, %19, %cst_9 {dimension_numbers = #tpu.dot_dimension_numbers<[1], [0], [0], [1], [0, 0, 1, 1], [], []>} : vector<256x640xbf16>, vector<640x128xbf16>, vector<256x128xf32> -> vector<256x128xf32>
      %21 = arith.addf %arg7, %20 : vector<256x128xf32>
      scf.yield %21 : vector<256x128xf32>
    }
    %c10_i32_0 = arith.constant 10 : i32
    %c0 = arith.constant 0 : index
    %c0_1 = arith.constant 0 : index
    %4 = vector.load %arg4[%c0, %c0_1] : memref<1x128xf32, #tpu.memory_space<vmem>>, vector<1x128xf32>
    %5 = vector.broadcast %4 : vector<1x128xf32> to vector<256x128xf32>
    %6 = arith.addf %3, %5 : vector<256x128xf32>
    %7 = arith.truncf %6 : vector<256x128xf32> to vector<256x128xbf16>
    %c0_2 = arith.constant 0 : index
    %c0_3 = arith.constant 0 : index
    %c0_4 = arith.constant 0 : index
    %8 = vector.load %arg5[%c0_2, %c0_3, %c0_4] : memref<1x256x128xbf16, #tpu.memory_space<vmem>>, vector<1x256x128xbf16>
    %9 = vector.shape_cast %8 : vector<1x256x128xbf16> to vector<256x128xbf16>
    %10 = vector.shape_cast %7 : vector<256x128xbf16> to vector<1x256x128xbf16>
    tpu.vector_store %arg5[%c0_2, %c0_3, %c0_4], %10 {strides = array<i32>} : memref<1x256x128xbf16, #tpu.memory_space<vmem>>, vector<1x256x128xbf16>,
    return
  }
  func.func @transform_0(%arg0: i32, %arg1: i32) -> (i32, i32, i32) {
    %c0_i32 = arith.constant 0 : i32
    %c0_i32_0 = arith.constant 0 : i32
    %c0_i32_1 = arith.constant 0 : i32
    return %arg0, %c0_i32, %c0_i32_0 : i32, i32, i32
  }
  func.func @transform_1(%arg0: i32, %arg1: i32) -> (i32, i32, i32) {
    %c0_i32 = arith.constant 0 : i32
    %c0_i32_0 = arith.constant 0 : i32
    %c0_i32_1 = arith.constant 0 : i32
    %c0_i32_2 = arith.constant 0 : i32
    return %c0_i32, %c0_i32_0, %c0_i32_1 : i32, i32, i32
  }
  func.func @transform_2(%arg0: i32, %arg1: i32) -> (i32, i32) {
    %c0_i32 = arith.constant 0 : i32
    %c0_i32_0 = arith.constant 0 : i32
    %c0_i32_1 = arith.constant 0 : i32
    return %c0_i32, %c0_i32_0 : i32, i32
  }
  func.func @transform_3(%arg0: i32, %arg1: i32) -> (i32, i32, i32) {
    %c0_i32 = arith.constant 0 : i32
    %c0_i32_0 = arith.constant 0 : i32
    return %arg0, %arg1, %c0_i32 : i32, i32, i32
  }
}

</mosaic_0001>

<bundles_post_ra>
// kernel: tpu_custom_call.1
= control target key start
LH: loop header
LB: loop body
LE: loop exit
PB: predicated region body
PF: predicated region fallthrough
CT: control target
= control target key end

     0   :  { %8 = vsyncpa [#allocation3], 0  ;;  %s4362_s0 = inlined_call_operand.hbm [shape: bf16[2,400,640], index: 0, kind: input, shape index: {}]   ;;  %s4363_s1 = inlined_call_operand.hbm [shape: bf16[10,640,128], index: 1, kind: input, shape index: {}]   ;;  %s4364_s2 = inlined_call_operand.hbm [shape: f32[1,128], index: 2, kind: input, shape index: {}]   ;;  %s4365_s3 = inlined_call_operand.hbm [shape: bf16[2,256,128], index: 3, kind: output, shape index: {}]  }
   0x1   :  { %10 = vsyncpa [#allocation3 + $0x1], 0 }
   0x2   :  { %11 = vsyncpa [#allocation6], 0 }
   0x3   :  { %12 = vsyncpa [#allocation4], 0 }
   0x4   :  { %14 = vsyncpa [#allocation4 + $0x1], 0  ;;  %s3489_s12 = smov 0   ;;  %s3491_s13 = smov 0  }
   0x5   :  { %s3493_s14 = smov 0   ;;  %s3495_s15 = smov 0  }
   0x6   :  { %s3497_s16 = smov 0   ;;  %s3499_s17 = smov 0  }
   0x7 LB: > { %s1921_s18 = sadd.s32 4294967295, %s3327_s17   ;;  %s1922_s19 = sadd.s32 4294967294, %s3327_s17   ;;  %s3327_s17 = sphi %s3499_s17, %s20_s17   ;;  %s3323_s16 = sphi %s3497_s16, %s4518_s16   ;;  %s3319_s15 = sphi %s3495_s15, %s4517_s15   ;;  %s3315_s14 = sphi %s3493_s14, %s4516_s14   ;;  %s3311_s13 = sphi %s3491_s13, %s4515_s13   ;;  %s3307_s12 = sphi %s3489_s12, %s4514_s12  }
   0x8   : > { %p52_p0 = scmp.ne.s32.totalorder %s3311_s13, %s3307_s12  ;;  %p3523_p1 = scmp.eq.s32.totalorder %s1921_s18, 0 }
   0x9   : > { %p3527_p2 = scmp.eq.s32.totalorder %s1921_s18, 1  ;;  %p126_p3 = scmp.eq.s32.totalorder %s1922_s19, 1 }
   0xa   : > { %p3533_p4 = por %p3523_p1, %p52_p0  ;;  %p1923_p5 = scmp.ge.s32.totalorder %s3327_s17, 1 }
   0xb   : > { %p3538_p6 = por %p126_p3, %p52_p0  ;;  %p133_p7 = scmp.lt.s32.totalorder %s3327_s17, 3 }
   0xc   : > { %s144_s26 = sshll.u32 %s4363_s1, 4  ;;  %s3461_s28 = smov [#allocation5]   ;;  %s145_s26 = int_to_ptr.hbm [resolvable:$true] %s144_s26 }
   0xd   : > { %p3546_p8 = pnand %p1923_p5, %p133_p7  ;;  %s146_s29 = sshll.u32 %s3461_s28, 4  ;;  %s147_s29 = int_to_ptr.vmem [resolvable:$true] %s146_s29 }
   0xe   : > { %p1926_p11 = scmp.ge.s32.totalorder %s3327_s17, 2  ;;  %s159_s5 = sshll.u32 %s4364_s2, 4  ;;  %s160_s5 = int_to_ptr.hbm [resolvable:$true] %s159_s5 }
   0xf   : > { %p2677_p9 = pneg %p3546_p8  ;;  %s3462_s6 = smov 64  }
  0x10   : > { %s3463_s7 = smov 4   ;;  %s3464_s8 = smov [#allocation7]  }
  0x11   : > { %p2678_p10 = pnand %p2677_p9, %p3523_p1  ;;  %s161_s9 = sshll.u32 %s3464_s8, 4  ;;  %s162_s9 = int_to_ptr.vmem [resolvable:$true] %s161_s9 }
  0x12   : > { %s32_s10 = sadd.s32 1, %s3323_s16  ;;  %s39_s11 = sadd.s32 1, %s3315_s14 }
  0x13   : > { %2680 = dma.hbm_to_vmem [thread:$0]  (!%p2678_p10), %s145_s26, 51200, %s147_s29, [#allocation6], %s3462_s6, %s3462_s6, %s3463_s7  }
  0x14   : > { %2683 = dma.hbm_to_vmem [thread:$0]  (!%p2678_p10), %s160_s5, 16, %s162_s9, [#allocation6]  }
  0x15   : > { %p34_p12 = scmp.ge.s32.totalorder %s32_s10, 2  ;;  %p46_p13 = scmp.ne.s32.totalorder %s3315_s14, %s3311_s13 }
  0x16   : > { %p47_p0 = scmp.eq.s32.totalorder %s3327_s17, 0  ;;  %p2694_p3 = scmp.lt.s32.totalorder %s3327_s17, 2 }
  0x17   : > { %s4520_s10 = smov (%p34_p12, %s32_s10), 0  ;;  %p3568_p7 = por %p3527_p2, %p46_p13 }
  0x18   : > { %p48_p5 = por %p47_p0, %p46_p13  ;;  %s36_s19 = ssub.s32 %s3323_s16, %s4520_s10 }
  0x19   : > { %s172_s24 = sand.u32 1, %s3315_s14   ;;  %p37_p9 = scmp.eq.s32.totalorder %s36_s19, 0 }
  0x1a   : > { %s2662_s25 = smul.u32 1000, %s172_s24  ;;  %p2685_p10 = pnand %p2694_p3, %p48_p5 }
  0x1b   : > { %s3576_s26 = scalar_select %p37_p9, %s3315_s14, %s39_s11  }
  0x1c   : > { %s2663_s28 = smul.u32 1000, %s3323_s16  ;;  %s176_s29 = scalar_lea.vmem [#allocation2], %s2662_s25 }
  0x1d   : > { %s184_s30 = sshll.u32 %s176_s29, 4  ;;  %s173_s7 = scalar_lea.sflag [#allocation3], %s172_s24  ;;  %s185_s30 = int_to_ptr.vmem [resolvable:$true] %s184_s30 }
  0x1e   : > { %s181_s6 = scalar_lea.hbm %s4362_s0, %s2663_s28  ;;  %s3465_s8 = smov 320  }
  0x1f   : > { %s182_s21 = sshll.u32 %s181_s6, 4  ;;  %s3466_s9 = smov 20   ;;  %s183_s21 = int_to_ptr.hbm [resolvable:$true] %s182_s21 }
  0x20   : > { %2687 = dma.hbm_to_vmem [thread:$0]  (!%p2685_p10), %s183_s21, 16000, %s185_s30, %s173_s7, %s3465_s8, %s3465_s8, %s3466_s9  }
  0x21   : > { %196 = sbr.rel (%p3546_p8) target bundleno = 559 (0x22f), region = 32 }
  0x26   : > { %s3585_s11 = sand.u32 1, %s3311_s13  }
  0x27   : > { %s2664_s19 = smul.u32 1000, %s3585_s11  ;;  %s199_s25 = scalar_lea.sflag [#allocation3], %s3585_s11 }
  0x29   : > { %s3589_s29 = scalar_lea.vmem [#allocation2], %s2664_s19 }
  0x2a   : > { %3294 = dma.done.wait (%p3533_p4), %s199_s25, 16000  }
  0x2b   : > { %3296 = vsyncadd (%p3533_p4), %s199_s25, 4294951296 }
  0x2c   : > { %3298 = dma.done.wait (%p3523_p1), [#allocation6], 51216  }
  0x2d   : > { %3300 = vsyncadd (%p3523_p1), [#allocation6], 4294916080  ;;  %s1931_s27 = sshll.u32 %s3585_s11, 7  ;;  %v3602_v0 = vmov 0.0   ;;  %v3604_v1 = vmov 0.0   ;;  %v3606_v2 = vmov 0.0  }
  0x2e   : > { %s3600_s24 = scalar_lea.vmem [#allocation8], %s1931_s27  ;;  %v3608_v3 = vmov 0.0   ;;  %v3610_v4 = vmov 0.0   ;;  %v3612_v5 = vmov 0.0   ;;  %v3614_v6 = vmov 0.0   ;;  %s3666_s20 = smov 0  }
  0x2f   : > { %v3616_v7 = vmov 0.0   ;;  %v3618_v8 = vmov 0.0   ;;  %v3620_v9 = vmov 0.0   ;;  %v3622_v10 = vmov 0.0  }
  0x30   : > { %v3624_v11 = vmov 0.0   ;;  %v3626_v12 = vmov 0.0   ;;  %v3628_v13 = vmov 0.0   ;;  %v3630_v14 = vmov 0.0  }
  0x31   : > { %v3632_v15 = vmov 0.0   ;;  %v3634_v16 = vmov 0.0   ;;  %v3636_v17 = vmov 0.0   ;;  %v3638_v18 = vmov 0.0  }
  0x32   : > { %v3640_v19 = vmov 0.0   ;;  %v3642_v20 = vmov 0.0   ;;  %v3644_v21 = vmov 0.0   ;;  %v3646_v22 = vmov 0.0  }
  0x33   : > { %v3648_v23 = vmov 0.0   ;;  %v3650_v24 = vmov 0.0   ;;  %v3652_v25 = vmov 0.0   ;;  %v3654_v26 = vmov 0.0  }
  0x34   : > { %v3656_v27 = vmov 0.0   ;;  %v3658_v28 = vmov 0.0   ;;  %v3660_v29 = vmov 0.0   ;;  %v3662_v30 = vmov 0.0  }
  0x35   : > { %v3664_v31 = vmov 0.0  }
  0x36 LB: >> { %4381 = vst [vmem:[#allocation12_spill] sm:$0xff] %v3331_v0  ;;  %s2501_s22 = smul.u32 320, %s3459_s20  ;;  %s1932_s30 = sshll.u32 %s3459_s20, 4  ;;  %s3459_s20 = sphi %s3666_s20, %s4502_s20   ;;  %v3455_v31 = vphi %v3664_v31, %v4501_v31   ;;  %v3451_v30 = vphi %v3662_v30, %v4500_v30   ;;  %v3447_v29 = vphi %v3660_v29, %v4499_v29   ;;  %v3443_v28 = vphi %v3658_v28, %v4498_v28   ;;  %v3439_v27 = vphi %v3656_v27, %v4497_v27   ;;  %v3435_v26 = vphi %v3654_v26, %v4496_v26   ;;  %v3431_v25 = vphi %v3652_v25, %v4495_v25   ;;  %v3427_v24 = vphi %v3650_v24, %v4494_v24   ;;  %v3423_v23 = vphi %v3648_v23, %v4493_v23   ;;  %v3419_v22 = vphi %v3646_v22, %v4492_v22   ;;  %v3415_v21 = vphi %v3644_v21, %v4491_v21   ;;  %v3411_v20 = vphi %v3642_v20, %v4490_v20   ;;  %v3407_v19 = vphi %v3640_v19, %v4489_v19   ;;  %v3403_v18 = vphi %v3638_v18, %v4488_v18   ;;  %v3399_v17 = vphi %v3636_v17, %v4487_v17   ;;  %v3395_v16 = vphi %v3634_v16, %v4486_v16   ;;  %v3391_v15 = vphi %v3632_v15, %v4485_v15   ;;  %v3387_v14 = vphi %v3630_v14, %v4484_v14   ;;  %v3383_v13 = vphi %v3628_v13, %v4483_v13   ;;  %v3379_v12 = vphi %v3626_v12, %v4482_v12   ;;  %v3375_v11 = vphi %v3624_v11, %v4481_v11   ;;  %v3371_v10 = vphi %v3622_v10, %v4480_v10   ;;  %v3367_v9 = vphi %v3620_v9, %v4479_v9   ;;  %v3363_v8 = vphi %v3618_v8, %v4478_v8   ;;  %v3359_v7 = vphi %v3616_v7, %v4477_v7   ;;  %v3355_v6 = vphi %v3614_v6, %v4476_v6   ;;  %v3351_v5 = vphi %v3612_v5, %v4475_v5   ;;  %v3347_v4 = vphi %v3610_v4, %v4474_v4   ;;  %v3343_v3 = vphi %v3608_v3, %v4473_v3   ;;  %v3339_v2 = vphi %v3606_v2, %v4472_v2   ;;  %v3335_v1 = vphi %v3604_v1, %v4470_v1   ;;  %v3331_v0 = vphi %v3602_v0, %v4468_v0  }
  0x37   : >> { %4382 = vst [vmem:[#allocation13_spill] sm:$0xff] %v3335_v1  ;;  %s278_s4 = sshra.s32 %s1932_s30, 3  ;;  %s243_s21 = sadd.s32 1, %s3459_s20  }
  0x38   : >> { %4383 = vst [vmem:[#allocation14_spill] sm:$0xff] %v3339_v2  ;;  %s3768_s28 = scalar_lea.vmem [#allocation5], %s2501_s22  ;;  %s2420_s5 = smul.u32 20, %s278_s4 }
  0x39   : >> { %4384 = vst [vmem:[#allocation15_spill] sm:$0xff] %v3343_v3  ;;  %v2509_v32 = vld [vmem:[%s3768_s28 + $0x38] sm:$0xff]  ;;  %v2508_v33 = vld [vmem:[%s3768_s28 + $0x30] sm:$0xff]  ;;  %v2507_v34 = vld [vmem:[%s3768_s28 + $0x28] sm:$0xff]  ;;  %p4169_p1 = scmp.ge.s32.totalorder %s243_s21, 10   ;;  %s4502_s20 = smov %s243_s21 }
  0x3a   : >> { %4385 = vst [vmem:[#allocation16_spill] sm:$0xff] %v3347_v4  ;;  %2638 = vmatpush.bf16.msra.mxu1 %v2509_v32  ;;  %2639 = vmatpush.bf16.msra.mxu2 %v2509_v32  ;;  %v2506_v35 = vld [vmem:[%s3768_s28 + $0x20] sm:$0xff]  ;;  %v2505_v36 = vld [vmem:[%s3768_s28 + $0x18] sm:$0xff]  ;;  %v2504_v37 = vld [vmem:[%s3768_s28 + $0x10] sm:$0xff]  ;;  %s3778_s6 = scalar_lea.vmem %s3589_s29, %s2420_s5 [#allocation2]  ;;  %s2542_s8 = sshll.u32 (%p4169_p1), %s3319_s15, 7 }
  0x3b   : >> { %4386 = vst [vmem:[#allocation17_spill] sm:$0xff] %v3351_v5  ;;  %2640 = vmatpush.bf16.msra.mxu3 %v2509_v32  ;;  %1118 = vmatpush.bf16.msra.mxu0 %v2509_v32  ;;  %v2503_v38 = vld [vmem:[%s3768_s28 + $0x8] sm:$0xff]  ;;  %v2502_v39 = vld [vmem:[%s3768_s28] sm:$0xff]  ;;  %v2443_v41 = vld [vmem:[%s3778_s6 + $0xb0] sm:$0xf0]  ;;  %s1709_s19 = scalar_lea.hbm (%p4169_p1), %s4365_s3, %s2542_s8  ;;  %s1710_s25 = sshll.u32 (%p4169_p1), %s3600_s24, 4  ;;  %s1711_s25 = int_to_ptr.vmem [resolvable:$true] %s1710_s25 }
  0x3c   : >> { %4387 = vst [vmem:[#allocation18_spill] sm:$0xff] %v3355_v6  ;;  %v2017_v40 = vld [vmem:[%s3778_s6 + $0xa0] sm:$0xf]  ;;  %v2463_v43 = vld [vmem:[%s3778_s6 + $0x150] sm:$0xf0]  ;;  %v2525_v48 = vld [vmem:[%s3768_s28 + $0xb8] sm:$0xff] }
  0x3d   : >> { %4388 = vst [vmem:[#allocation19_spill] sm:$0xff] %v3359_v7  ;;  %v2097_v42 = vld [vmem:[%s3778_s6 + $0x140] sm:$0xf]  ;;  %v2483_v45 = vld [vmem:[%s3778_s6 + $0x1f0] sm:$0xf0]  ;;  %v2533_v49 = vld [vmem:[%s3768_s28 + $0xf8] sm:$0xff]  ;;  %v2018_v50 = vor.u32 %v2443_v41, %v2017_v40 }
  0x3e   : >> { %4389 = vst [vmem:[#allocation20_spill] sm:$0xff] %v3363_v8  ;;  %2641 = vmatpush.bf16.msra.mxu1 %v2508_v33  ;;  %2642 = vmatpush.bf16.msra.mxu2 %v2508_v33  ;;  %v2177_v44 = vld [vmem:[%s3778_s6 + $0x1e0] sm:$0xf]  ;;  %v2423_v47 = vld [vmem:[%s3778_s6 + $0x10] sm:$0xf0]  ;;  %v2098_v51 = vor.u32 %v2463_v43, %v2097_v42  ;;  %v2517_v54 = vld [vmem:[%s3768_s28 + $0x78] sm:$0xff] }
  0x3f   : >> { %4390 = vst [vmem:[#allocation21_spill] sm:$0xff] %v3367_v9  ;;  %2643 = vmatpush.bf16.msra.mxu3 %v2508_v33  ;;  %1119 = vmatpush.bf16.msra.mxu0 %v2508_v33  ;;  %v1937_v46 = vld [vmem:[%s3778_s6] sm:$0xf]  ;;  %v2178_v52 = vor.u32 %v2483_v45, %v2177_v44  ;;  %v2541_v55 = vld [vmem:[%s3768_s28 + $0x138] sm:$0xff]  ;;  %v2524_v56 = vld [vmem:[%s3768_s28 + $0xb0] sm:$0xff]  ;;  %s1712_s29 = sshll.u32 (%p4169_p1), %s1709_s19, 4  ;;  %s1713_s29 = int_to_ptr.hbm [resolvable:$true] %s1712_s29 }
  0x40   : >> { %4391 = vst [vmem:[#allocation22_spill] sm:$0xff] %v3371_v10  ;;  %v1938_v53 = vor.u32 %v2423_v47, %v1937_v46  ;;  %v2532_v57 = vld [vmem:[%s3768_s28 + $0xf0] sm:$0xff]  ;;  %v2523_v60 = vld [vmem:[%s3768_s28 + $0xa8] sm:$0xff]  ;;  %v2522_v33 = vld [vmem:[%s3768_s28 + $0xa0] sm:$0xff]  ;;  %s1696_s27 = scalar_lea.sflag (%p4169_p1), [#allocation4], %s3585_s11  ;;  %s3123_s20 = sshra.s32 (%p4169_p1), %s1713_s29, 4  ;;  %s3124_s20 = int_to_ptr.hbm [resolvable:$true] %s3123_s20 }
  0x41   : >> { %v2516_v58 = vld [vmem:[%s3768_s28 + $0x70] sm:$0xff]  ;;  %v2531_v61 = vld [vmem:[%s3768_s28 + $0xe8] sm:$0xff]  ;;  %v2428_v41 = vld [vmem:[%s3778_s6 + $0x38] sm:$0xf0]  ;;  %s3125_s22 = scalar_lea.hbm (%p4169_p1), %s3124_s20, 128  ;;  %s3129_s4 = scalar_lea.hbm (%p4169_p1), %s4365_s3, 256 }
  0x42   : >> { %2644 = vmatpush.bf16.msra.mxu1 %v2507_v34  ;;  %2645 = vmatpush.bf16.msra.mxu2 %v2507_v34  ;;  %v2540_v59 = vld [vmem:[%s3768_s28 + $0x130] sm:$0xff]  ;;  %v2515_v62 = vld [vmem:[%s3768_s28 + $0x68] sm:$0xff]  ;;  %v2514_v42 = vld [vmem:[%s3768_s28 + $0x60] sm:$0xff]  ;;  %p3126_p2 = scmp.ne.s32.totalorder (%p4169_p1), %s3124_s20, %s3125_s22  ;;  %p3130_p12 = scmp.lt.s32.totalorder (%p4169_p1), %s3124_s20, %s4365_s3 }
  0x43   : >> { %2646 = vmatpush.bf16.msra.mxu3 %v2507_v34  ;;  %1120 = vmatpush.bf16.msra.mxu0 %v2507_v34  ;;  %v2539_v63 = vld [vmem:[%s3768_s28 + $0x128] sm:$0xff]  ;;  %v2530_v34 = vld [vmem:[%s3768_s28 + $0xe0] sm:$0xff]  ;;  %v2521_v44 = vld [vmem:[%s3768_s28 + $0x98] sm:$0xff]  ;;  %p3131_p13 = scmp.lt.s32.totalorder (%p4169_p1), %s3129_s4, %s3125_s22 }
  0x44   : >> { %v2037_v32 = vld [vmem:[%s3778_s6 + $0xc8] sm:$0xf]  ;;  %v2538_v43 = vld [vmem:[%s3768_s28 + $0x120] sm:$0xff]  ;;  %v2529_v45 = vld [vmem:[%s3768_s28 + $0xd8] sm:$0xff]  ;;  %p3127_p4 = pnand (%p4169_p1), %p3126_p2, %p3568_p7 }
  0x45   : >> { %v1957_v40 = vld [vmem:[%s3778_s6 + $0x28] sm:$0xf]  ;;  %v2460_v1 = vld [vmem:[%s3778_s6 + $0x138] sm:$0xf0]  ;;  %v2113_v5 = vld [vmem:[%s3778_s6 + $0x150] sm:$0xf]  ;;  %p3132_p0 = por (%p4169_p1), %p3131_p13, %p3130_p12 }
  0x46   : >> { %2647 = vmatpush.bf16.msra.mxu1 %v2506_v35  ;;  %2648 = vmatpush.bf16.msra.mxu2 %v2506_v35  ;;  %v2093_v0 = vld [vmem:[%s3778_s6 + $0x128] sm:$0xf]  ;;  %v2467_v8 = vld [vmem:[%s3778_s6 + $0x174] sm:$0xf]  ;;  %p3128_p8 = pneg (%p4169_p1), %p3127_p4 }
  0x47   : >> { %2649 = vmatpush.bf16.msra.mxu3 %v2506_v35  ;;  %1121 = vmatpush.bf16.msra.mxu0 %v2506_v35  ;;  %v2448_v35 = vld [vmem:[%s3778_s6 + $0xd8] sm:$0xf0] }
  0x48   : >> { %v2038_v46 = vor.u32 %v2448_v35, %v2037_v32  ;;  %v2137_v32 = vld [vmem:[%s3778_s6 + $0x190] sm:$0xf]  ;;  %v2493_v35 = vld [vmem:[%s3778_s6 + $0x240] sm:$0xf0]  ;;  %p3133_p3 = pnand (%p4169_p1), %p3132_p0, %p3128_p8 }
  0x4a   : >> { %2650 = vmatpush.bf16.msra.mxu1 %v2505_v36  ;;  %2651 = vmatpush.bf16.msra.mxu2 %v2505_v36 }
  0x4b   : >> { %2652 = vmatpush.bf16.msra.mxu3 %v2505_v36  ;;  %1122 = vmatpush.bf16.msra.mxu0 %v2505_v36  ;;  %v2117_v36 = vld [vmem:[%s3778_s6 + $0x168] sm:$0xf] }
  0x4e   : >> { %2653 = vmatpush.bf16.msra.mxu1 %v2504_v37  ;;  %2654 = vmatpush.bf16.msra.mxu2 %v2504_v37 }
  0x4f   : >> { %2655 = vmatpush.bf16.msra.mxu3 %v2504_v37  ;;  %1123 = vmatpush.bf16.msra.mxu0 %v2504_v37  ;;  %v2468_v37 = vld [vmem:[%s3778_s6 + $0x178] sm:$0xf0] }
  0x50   : >> { %v2118_v47 = vor.u32 %v2468_v37, %v2117_v36  ;;  %v1977_v36 = vld [vmem:[%s3778_s6 + $0x50] sm:$0xf]  ;;  %v2433_v37 = vld [vmem:[%s3778_s6 + $0x60] sm:$0xf0] }
  0x52   : >> { %2656 = vmatpush.bf16.msra.mxu1 %v2503_v38  ;;  %2657 = vmatpush.bf16.msra.mxu2 %v2503_v38 }
  0x53   : >> { %2658 = vmatpush.bf16.msra.mxu3 %v2503_v38  ;;  %1124 = vmatpush.bf16.msra.mxu0 %v2503_v38  ;;  %v2197_v38 = vld [vmem:[%s3778_s6 + $0x208] sm:$0xf] }
  0x56   : >> { %2659 = vmatpush.bf16.msra.mxu1 %v2502_v39  ;;  %2660 = vmatpush.bf16.msra.mxu2 %v2502_v39 }
  0x57   : >> { %2661 = vmatpush.bf16.msra.mxu3 %v2502_v39  ;;  %1125 = vmatpush.bf16.msra.mxu0 %v2502_v39  ;;  %v2488_v39 = vld [vmem:[%s3778_s6 + $0x218] sm:$0xf0] }
  0x59   : >> { %1146 = vmatmul.bf16.vlgmr.msra.gmra.mxu1 %v2018_v50  ;;  %1166 = vmatmul.bf16.vlgmr.msra.gmra.mxu2 %v2098_v51  ;;  %v2513_v50 = vld [vmem:[%s3768_s28 + $0x58] sm:$0xff] }
  0x5a   : >> { %1296 = vmatpush.bf16.msrb.mxu2 %v2525_v48  ;;  %1186 = vmatmul.bf16.vlgmr.msra.gmra.mxu3 %v2178_v52  ;;  %v2198_v48 = vor.u32 %v2488_v39, %v2197_v38  ;;  %v2537_v51 = vld [vmem:[%s3768_s28 + $0x118] sm:$0xff]  ;;  %v2520_v52 = vld [vmem:[%s3768_s28 + $0x90] sm:$0xff]  ;;  %v2510_v38 = vld [vmem:[%s3768_s28 + $0x40] sm:$0xff] }
  0x5b   : >> { %1385 = vmatpush.bf16.msrb.mxu3 %v2533_v49  ;;  %1126 = vmatmul.bf16.vlgmr.msra.gmra.mxu0 %v1938_v53  ;;  %v1958_v49 = vor.u32 %v2428_v41, %v1957_v40  ;;  %v2528_v53 = vld [vmem:[%s3768_s28 + $0xd0] sm:$0xff]  ;;  %v2534_v39 = vld [vmem:[%s3768_s28 + $0x100] sm:$0xff] }
  0x5c   : >> { %1207 = vmatpush.bf16.msrb.mxu1 %v2517_v54  ;;  %1474 = vmatpush.bf16.msrb.mxu0 %v2541_v55  ;;  %v2512_v54 = vld [vmem:[%s3768_s28 + $0x50] sm:$0xff] }
  0x5d   : >> { %v2536_v55 = vld [vmem:[%s3768_s28 + $0x110] sm:$0xff] }
  0x5e   : >> { %1297 = vmatpush.bf16.msrb.mxu2 %v2524_v56  ;;  %v2519_v56 = vld [vmem:[%s3768_s28 + $0x88] sm:$0xff] }
  0x5f   : >> { %1386 = vmatpush.bf16.msrb.mxu3 %v2532_v57  ;;  %v2527_v57 = vld [vmem:[%s3768_s28 + $0xc8] sm:$0xff] }
  0x60   : >> { %1208 = vmatpush.bf16.msrb.mxu1 %v2516_v58  ;;  %1475 = vmatpush.bf16.msrb.mxu0 %v2540_v59  ;;  %v2511_v58 = vld [vmem:[%s3768_s28 + $0x48] sm:$0xff] }
  0x61   : >> { %v2535_v59 = vld [vmem:[%s3768_s28 + $0x108] sm:$0xff] }
  0x62   : >> { %1298 = vmatpush.bf16.msrb.mxu2 %v2523_v60  ;;  %v2057_v60 = vld [vmem:[%s3778_s6 + $0xf0] sm:$0xf] }
  0x63   : >> { %1387 = vmatpush.bf16.msrb.mxu3 %v2531_v61  ;;  %v2518_v61 = vld [vmem:[%s3768_s28 + $0x80] sm:$0xff] }
  0x64   : >> { %1209 = vmatpush.bf16.msrb.mxu1 %v2515_v62  ;;  %1476 = vmatpush.bf16.msrb.mxu0 %v2539_v63  ;;  %v2526_v62 = vld [vmem:[%s3768_s28 + $0xc0] sm:$0xff] }
  0x65   : >> { %v2453_v63 = vld [vmem:[%s3778_s6 + $0x100] sm:$0xf0] }
  0x66   : >> { %1299 = vmatpush.bf16.msrb.mxu2 %v2522_v33  ;;  %v2473_v33 = vld [vmem:[%s3778_s6 + $0x1a0] sm:$0xf0]  ;;  %v2058_v40 = vor.u32 %v2453_v63, %v2057_v60  ;;  %v2422_v60 = vld [vmem:[%s3778_s6 + $0xc] sm:$0xf] }
  0x67   : >> { %1388 = vmatpush.bf16.msrb.mxu3 %v2530_v34  ;;  %v2217_v34 = vld [vmem:[%s3778_s6 + $0x230] sm:$0xf]  ;;  %v2138_v41 = vor.u32 %v2473_v33, %v2137_v32  ;;  %v2425_v63 = vld [vmem:[%s3778_s6 + $0x20] sm:$0xf0] }
  0x68   : >> { %1210 = vmatpush.bf16.msrb.mxu1 %v2514_v42  ;;  %1477 = vmatpush.bf16.msrb.mxu0 %v2538_v43  ;;  %v2218_v42 = vor.u32 %v2493_v35, %v2217_v34  ;;  %v1978_v43 = vor.u32 %v2433_v37, %v1977_v36  ;;  %v2426_v36 = vld [vmem:[%s3778_s6 + $0x2c] sm:$0xf]  ;;  %v1959_v37 = vld [vmem:[%s3778_s6 + $0x3c] sm:$0xf0] }
  0x69   : >> { %1151 = vmatmul.bf16.gmra.mxu1 %v2038_v46  ;;  %1171 = vmatmul.bf16.gmra.mxu2 %v2118_v47  ;;  %v2157_v46 = vld [vmem:[%s3778_s6 + $0x1b8] sm:$0xf]  ;;  %v2478_v47 = vld [vmem:[%s3778_s6 + $0x1c8] sm:$0xf0] }
  0x6a   : >> { %1300 = vmatpush.bf16.msrb.mxu2 %v2521_v44  ;;  %1191 = vmatmul.bf16.gmra.mxu3 %v2198_v48  ;;  %v2077_v44 = vld [vmem:[%s3778_s6 + $0x118] sm:$0xf] }
  0x6b   : >> { %1389 = vmatpush.bf16.msrb.mxu3 %v2529_v45  ;;  %1131 = vmatmul.bf16.gmra.mxu0 %v1958_v49  ;;  %v2458_v45 = vld [vmem:[%s3778_s6 + $0x128] sm:$0xf0]  ;;  %v2237_v48 = vld [vmem:[%s3778_s6 + $0x258] sm:$0xf] }
  0x6c   : >> { %1211 = vmatpush.bf16.msrb.mxu1 %v2513_v50  ;;  %1478 = vmatpush.bf16.msrb.mxu0 %v2537_v51  ;;  %v2498_v49 = vld [vmem:[%s3778_s6 + $0x268] sm:$0xf0]  ;;  %v1997_v50 = vld [vmem:[%s3778_s6 + $0x78] sm:$0xf] }
  0x6d   : >> { %v2438_v51 = vld [vmem:[%s3778_s6 + $0x88] sm:$0xf0] }
  0x6e   : >> { %1301 = vmatpush.bf16.msrb.mxu2 %v2520_v52  ;;  %v2078_v52 = vor.u32 %v2458_v45, %v2077_v44  ;;  %v1962_v44 = vor.u32 %v2426_v36, %v1959_v37 }
  0x6f   : >> { %1390 = vmatpush.bf16.msrb.mxu3 %v2528_v53  ;;  %v2158_v53 = vor.u32 %v2478_v47, %v2157_v46 }
  0x70   : >> { %1212 = vmatpush.bf16.msrb.mxu1 %v2512_v54  ;;  %1479 = vmatpush.bf16.msrb.mxu0 %v2536_v55  ;;  %v2238_v54 = vor.u32 %v2498_v49, %v2237_v48  ;;  %v1998_v55 = vor.u32 %v2438_v51, %v1997_v50  ;;  %v2431_v48 = vld [vmem:[%s3778_s6 + $0x54] sm:$0xf]  ;;  %v1979_v49 = vld [vmem:[%s3778_s6 + $0x64] sm:$0xf0]  ;;  %v1985_v50 = vld [vmem:[%s3778_s6 + $0x58] sm:$0xf] }
  0x71   : >> { %v2434_v51 = vld [vmem:[%s3778_s6 + $0x68] sm:$0xf0] }
  0x72   : >> { %1302 = vmatpush.bf16.msrb.mxu2 %v2519_v56  ;;  %v2421_v56 = vld [vmem:[%s3778_s6 + $0x4] sm:$0xf] }
  0x73   : >> { %1391 = vmatpush.bf16.msrb.mxu3 %v2527_v57  ;;  %v1939_v57 = vld [vmem:[%s3778_s6 + $0x14] sm:$0xf0] }
  0x74   : >> { %1213 = vmatpush.bf16.msrb.mxu1 %v2511_v58  ;;  %1480 = vmatpush.bf16.msrb.mxu0 %v2535_v59  ;;  %v1945_v58 = vld [vmem:[%s3778_s6 + $0x8] sm:$0xf]  ;;  %v2424_v59 = vld [vmem:[%s3778_s6 + $0x18] sm:$0xf0]  ;;  %v1942_v32 = vor.u32 %v2421_v56, %v1939_v57  ;;  %v1982_v56 = vor.u32 %v2431_v48, %v1979_v49  ;;  %v1986_v57 = vor.u32 %v2434_v51, %v1985_v50 }
  0x75   : >> { %v1946_v33 = vor.u32 %v2424_v59, %v1945_v58 }
  0x76   : >> { %1303 = vmatpush.bf16.msrb.mxu2 %v2518_v61  ;;  %v1947_v61 = vld [vmem:[%s3778_s6 + $0x1c] sm:$0xf0] }
  0x77   : >> { %1392 = vmatpush.bf16.msrb.mxu3 %v2526_v62  ;;  %v1953_v62 = vld [vmem:[%s3778_s6 + $0x10] sm:$0xf]  ;;  %v1950_v34 = vor.u32 %v2422_v60, %v1947_v61  ;;  %v2436_v60 = vld [vmem:[%s3778_s6 + $0x7c] sm:$0xf] }
  0x78   : >> { %1214 = vmatpush.bf16.msrb.mxu1 %v2510_v38  ;;  %1481 = vmatpush.bf16.msrb.mxu0 %v2534_v39  ;;  %v1954_v35 = vor.u32 %v2425_v63, %v1953_v62  ;;  %v1965_v38 = vld [vmem:[%s3778_s6 + $0x30] sm:$0xf]  ;;  %v2429_v39 = vld [vmem:[%s3778_s6 + $0x40] sm:$0xf0]  ;;  %v2005_v62 = vld [vmem:[%s3778_s6 + $0x80] sm:$0xf] }
  0x79   : >> { %1156 = vmatmul.bf16.gmra.mxu1 %v2058_v40  ;;  %1176 = vmatmul.bf16.gmra.mxu2 %v2138_v41  ;;  %v2427_v40 = vld [vmem:[%s3778_s6 + $0x34] sm:$0xf]  ;;  %v1967_v41 = vld [vmem:[%s3778_s6 + $0x44] sm:$0xf0]  ;;  %v1966_v45 = vor.u32 %v2429_v39, %v1965_v38  ;;  %v1999_v61 = vld [vmem:[%s3778_s6 + $0x8c] sm:$0xf0] }
  0x7a   : >> { %1196 = vmatmul.bf16.gmra.mxu3 %v2218_v42  ;;  %v1973_v42 = vld [vmem:[%s3778_s6 + $0x38] sm:$0xf]  ;;  %v1970_v46 = vor.u32 %v2427_v40, %v1967_v41  ;;  %v2439_v63 = vld [vmem:[%s3778_s6 + $0x90] sm:$0xf0]  ;;  %v2002_v36 = vor.u32 %v2436_v60, %v1999_v61  ;;  %v2441_v40 = vld [vmem:[%s3778_s6 + $0xa4] sm:$0xf] }
  0x7b   : >> { %1136 = vmatmul.bf16.gmra.mxu0 %v1978_v43  ;;  %v2430_v43 = vld [vmem:[%s3778_s6 + $0x48] sm:$0xf0]  ;;  %v2006_v37 = vor.u32 %v2439_v63, %v2005_v62  ;;  %v2019_v41 = vld [vmem:[%s3778_s6 + $0xb4] sm:$0xf0]  ;;  %v2045_v60 = vld [vmem:[%s3778_s6 + $0xd0] sm:$0xf] }
  0x7c   : >> { %v1974_v47 = vor.u32 %v2430_v43, %v1973_v42  ;;  %v2025_v42 = vld [vmem:[%s3778_s6 + $0xa8] sm:$0xf]  ;;  %v2444_v43 = vld [vmem:[%s3778_s6 + $0xb8] sm:$0xf0]  ;;  %v2022_v48 = vor.u32 %v2441_v40, %v2019_v41  ;;  %v2449_v61 = vld [vmem:[%s3778_s6 + $0xe0] sm:$0xf0] }
  0x7d   : >> { %v2026_v49 = vor.u32 %v2444_v43, %v2025_v42  ;;  %v2447_v62 = vld [vmem:[%s3778_s6 + $0xd4] sm:$0xf]  ;;  %v2047_v63 = vld [vmem:[%s3778_s6 + $0xe4] sm:$0xf0] }
  0x89   : >> { %1161 = vmatmul.bf16.gmra.mxu1 %v2078_v52  ;;  %1181 = vmatmul.bf16.gmra.mxu2 %v2158_v53  ;;  %v2432_v52 = vld [vmem:[%s3778_s6 + $0x5c] sm:$0xf]  ;;  %v1987_v53 = vld [vmem:[%s3778_s6 + $0x6c] sm:$0xf0] }
  0x8a   : >> { %1201 = vmatmul.bf16.gmra.mxu3 %v2238_v54  ;;  %v1993_v54 = vld [vmem:[%s3778_s6 + $0x60] sm:$0xf]  ;;  %v1990_v58 = vor.u32 %v2432_v52, %v1987_v53 }
  0x8b   : >> { %1141 = vmatmul.bf16.gmra.mxu0 %v1998_v55  ;;  %v2435_v55 = vld [vmem:[%s3778_s6 + $0x70] sm:$0xf0] }
  0x8c   : >> { %v1994_v59 = vor.u32 %v2435_v55, %v1993_v54 }
  0x99   : >> { %1215 = vmatmul.bf16.vlgmr.msrb.gmra.mxu1 %v1942_v32  ;;  %1304 = vmatmul.bf16.vlgmr.msrb.gmra.mxu2 %v1946_v33  ;;  %v2437_v32 = vld [vmem:[%s3778_s6 + $0x84] sm:$0xf]  ;;  %v2007_v33 = vld [vmem:[%s3778_s6 + $0x94] sm:$0xf0] }
  0x9a   : >> { %1393 = vmatmul.bf16.vlgmr.msrb.gmra.mxu3 %v1950_v34  ;;  %v2013_v34 = vld [vmem:[%s3778_s6 + $0x88] sm:$0xf]  ;;  %v2010_v38 = vor.u32 %v2437_v32, %v2007_v33  ;;  %v2053_v32 = vld [vmem:[%s3778_s6 + $0xd8] sm:$0xf]  ;;  %v2450_v33 = vld [vmem:[%s3778_s6 + $0xe8] sm:$0xf0] }
  0x9b   : >> { %1482 = vmatmul.bf16.vlgmr.msrb.gmra.mxu0 %v1954_v35  ;;  %v2440_v35 = vld [vmem:[%s3778_s6 + $0x98] sm:$0xf0]  ;;  %v2054_v40 = vor.u32 %v2450_v33, %v2053_v32 }
  0x9c   : >> { %v2014_v39 = vor.u32 %v2440_v35, %v2013_v34 }
  0xa9   : >> { %1220 = vmatmul.bf16.gmra.mxu1 %v1962_v44  ;;  %1309 = vmatmul.bf16.gmra.mxu2 %v1966_v45  ;;  %v2442_v44 = vld [vmem:[%s3778_s6 + $0xac] sm:$0xf]  ;;  %v2027_v45 = vld [vmem:[%s3778_s6 + $0xbc] sm:$0xf0] }
  0xaa   : >> { %1398 = vmatmul.bf16.gmra.mxu3 %v1970_v46  ;;  %v2033_v46 = vld [vmem:[%s3778_s6 + $0xb0] sm:$0xf]  ;;  %v2030_v51 = vor.u32 %v2442_v44, %v2027_v45 }
  0xab   : >> { %1487 = vmatmul.bf16.gmra.mxu0 %v1974_v47  ;;  %v2445_v47 = vld [vmem:[%s3778_s6 + $0xc0] sm:$0xf0] }
  0xac   : >> { %v2034_v52 = vor.u32 %v2445_v47, %v2033_v46  ;;  %v2451_v46 = vld [vmem:[%s3778_s6 + $0xf4] sm:$0xf]  ;;  %v2059_v47 = vld [vmem:[%s3778_s6 + $0x104] sm:$0xf0] }
  0xb9   : >> { %1225 = vmatmul.bf16.gmra.mxu1 %v1982_v56  ;;  %1314 = vmatmul.bf16.gmra.mxu2 %v1986_v57 }
  0xba   : >> { %1403 = vmatmul.bf16.gmra.mxu3 %v1990_v58  ;;  %v2446_v58 = vld [vmem:[%s3778_s6 + $0xcc] sm:$0xf] }
  0xbb   : >> { %1492 = vmatmul.bf16.gmra.mxu0 %v1994_v59  ;;  %v2039_v59 = vld [vmem:[%s3778_s6 + $0xdc] sm:$0xf0] }
  0xc9   : >> { %1230 = vmatmul.bf16.gmra.mxu1 %v2002_v36  ;;  %1319 = vmatmul.bf16.gmra.mxu2 %v2006_v37  ;;  %v2042_v36 = vor.u32 %v2446_v58, %v2039_v59  ;;  %v2046_v37 = vor.u32 %v2449_v61, %v2045_v60  ;;  %v2073_v58 = vld [vmem:[%s3778_s6 + $0x100] sm:$0xf]  ;;  %v2455_v59 = vld [vmem:[%s3778_s6 + $0x110] sm:$0xf0] }
  0xca   : >> { %1408 = vmatmul.bf16.gmra.mxu3 %v2010_v38 }
  0xcb   : >> { %1497 = vmatmul.bf16.gmra.mxu0 %v2014_v39  ;;  %v2050_v39 = vor.u32 %v2447_v62, %v2047_v63  ;;  %v2062_v62 = vor.u32 %v2451_v46, %v2059_v47 }
  0xd6   : >> { %v3886_v50 = vpop.f32.mrf.mxu1 }
  0xd8   : >> { %v3888_v53 = vpop.f32.mrf.mxu0 }
  0xd9   : >> { %1235 = vmatmul.bf16.gmra.mxu1 %v2022_v48  ;;  %1324 = vmatmul.bf16.gmra.mxu2 %v2026_v49  ;;  %v2065_v48 = vld [vmem:[%s3778_s6 + $0xf8] sm:$0xf]  ;;  %v2454_v49 = vld [vmem:[%s3778_s6 + $0x108] sm:$0xf0] }
  0xda   : >> { %1413 = vmatmul.bf16.gmra.mxu3 %v2030_v51  ;;  %v2452_v51 = vld [vmem:[%s3778_s6 + $0xfc] sm:$0xf]  ;;  %v2066_v63 = vor.u32 %v2454_v49, %v2065_v48  ;;  %v2079_v49 = vld [vmem:[%s3778_s6 + $0x12c] sm:$0xf0] }
  0xdb   : >> { %1502 = vmatmul.bf16.gmra.mxu0 %v2034_v52  ;;  %v2067_v52 = vld [vmem:[%s3778_s6 + $0x10c] sm:$0xf0]  ;;  %v2456_v48 = vld [vmem:[%s3778_s6 + $0x11c] sm:$0xf] }
  0xdc   : >> { %v3890_v54 = vpop.f32.mrf.mxu2  ;;  %v2070_v33 = vor.u32 %v2452_v51, %v2067_v52  ;;  %v2085_v51 = vld [vmem:[%s3778_s6 + $0x120] sm:$0xf]  ;;  %v2459_v52 = vld [vmem:[%s3778_s6 + $0x130] sm:$0xf0] }
  0xdd   : >> { %v3892_v55 = vpop.f32.mrf.mxu3 }
  0xde   : >> { %4392 = vst [vmem:[#allocation23_spill] sm:$0xff] %v3892_v55  ;;  %v3894_v56 = vpop.f32.mrf.mxu1 }
  0xe0   : >> { %v3896_v57 = vpop.f32.mrf.mxu0 }
  0xe4   : >> { %v3906_v34 = vpop.f32.mrf.mxu2 }
  0xe5   : >> { %v3908_v35 = vpop.f32.mrf.mxu3 }
  0xe6   : >> { %4393 = vst [vmem:[#allocation24_spill] sm:$0xff] %v3908_v35  ;;  %v3910_v38 = vpop.f32.mrf.mxu1 }
  0xe8   : >> { %v3912_v41 = vpop.f32.mrf.mxu0 }
  0xe9   : >> { %1240 = vmatmul.bf16.gmra.mxu1 %v2042_v36  ;;  %1329 = vmatmul.bf16.gmra.mxu2 %v2046_v37  ;;  %v2074_v36 = vor.u32 %v2455_v59, %v2073_v58  ;;  %v2457_v58 = vld [vmem:[%s3778_s6 + $0x124] sm:$0xf]  ;;  %v2087_v59 = vld [vmem:[%s3778_s6 + $0x134] sm:$0xf0] }
  0xea   : >> { %1418 = vmatmul.bf16.gmra.mxu3 %v2050_v39  ;;  %v2090_v3 = vor.u32 %v2457_v58, %v2087_v59  ;;  %v2099_v58 = vld [vmem:[%s3778_s6 + $0x154] sm:$0xf0]  ;;  %v2105_v59 = vld [vmem:[%s3778_s6 + $0x148] sm:$0xf] }
  0xeb   : >> { %1507 = vmatmul.bf16.gmra.mxu0 %v2054_v40 }
  0xec   : >> { %v3914_v42 = vpop.f32.mrf.mxu2 }
  0xed   : >> { %v3916_v43 = vpop.f32.mrf.mxu3 }
  0xee   : >> { %4394 = vst [vmem:[#allocation25_spill] sm:$0xff] %v3916_v43  ;;  %v3918_v44 = vpop.f32.mrf.mxu1  ;;  %v2465_v43 = vld [vmem:[%s3778_s6 + $0x160] sm:$0xf0] }
  0xef   : >> { %v2114_v35 = vor.u32 %v2465_v43, %v2113_v5 }
  0xf0   : >> { %v3920_v45 = vpop.f32.mrf.mxu0 }
  0xf4   : >> { %v3930_v60 = vpop.f32.mrf.mxu2 }
  0xf5   : >> { %v3932_v61 = vpop.f32.mrf.mxu3 }
  0xf6   : >> { %4395 = vst [vmem:[#allocation26_spill] sm:$0xff] %v3932_v61  ;;  %v3934_v32 = vpop.f32.mrf.mxu1  ;;  %v2107_v61 = vld [vmem:[%s3778_s6 + $0x15c] sm:$0xf0] }
  0xf8   : >> { %v3936_v37 = vpop.f32.mrf.mxu0 }
  0xf9   : >> { %1245 = vmatmul.bf16.gmra.mxu1 %v2062_v62  ;;  %1334 = vmatmul.bf16.gmra.mxu2 %v2066_v63 }
  0xfa   : >> { %1423 = vmatmul.bf16.gmra.mxu3 %v2070_v33  ;;  %v2082_v33 = vor.u32 %v2456_v48, %v2079_v49 }
  0xfb   : >> { %1512 = vmatmul.bf16.gmra.mxu0 %v2074_v36  ;;  %v2086_v36 = vor.u32 %v2459_v52, %v2085_v51  ;;  %v2461_v52 = vld [vmem:[%s3778_s6 + $0x144] sm:$0xf] }
  0xfc   : >> { %v3938_v39 = vpop.f32.mrf.mxu2 }
  0xfd   : >> { %v3940_v40 = vpop.f32.mrf.mxu3 }
  0xfe   : >> { %4396 = vst [vmem:[#allocation27_spill] sm:$0xff] %v3940_v40  ;;  %v3942_v46 = vpop.f32.mrf.mxu1  ;;  %v2094_v40 = vor.u32 %v2460_v1, %v2093_v0  ;;  %v2464_v0 = vld [vmem:[%s3778_s6 + $0x158] sm:$0xf0]  ;;  %v2462_v1 = vld [vmem:[%s3778_s6 + $0x14c] sm:$0xf] }
 0x100   : >> { %v3944_v47 = vpop.f32.mrf.mxu0 }
 0x104   : >> { %v3954_v62 = vpop.f32.mrf.mxu2 }
 0x105   : >> { %4397 = vst [vmem:[#allocation28_spill] sm:$0xff] %v3954_v62  ;;  %v3956_v63 = vpop.f32.mrf.mxu3 }
 0x106   : >> { %4398 = vst [vmem:[#allocation29_spill] sm:$0xff] %v3956_v63  ;;  %v3958_v2 = vpop.f32.mrf.mxu1 }
 0x108   : >> { %v3960_v4 = vpop.f32.mrf.mxu0 }
 0x109   : >> { %1250 = vmatmul.bf16.gmra.mxu1 %v2082_v33  ;;  %1339 = vmatmul.bf16.gmra.mxu2 %v2086_v36  ;;  %v2106_v36 = vor.u32 %v2464_v0, %v2105_v59  ;;  %v2119_v0 = vld [vmem:[%s3778_s6 + $0x17c] sm:$0xf0] }
 0x10a   : >> { %1428 = vmatmul.bf16.gmra.mxu3 %v2090_v3 }
 0x10b   : >> { %1517 = vmatmul.bf16.gmra.mxu0 %v2094_v40  ;;  %v2102_v40 = vor.u32 %v2461_v52, %v2099_v58 }
 0x10c   : >> { %v3962_v63 = vpop.f32.mrf.mxu2 }
 0x10d   : >> { %4399 = vst [vmem:[#allocation30_spill] sm:$0xff] %v3962_v63  ;;  %v3964_v48 = vpop.f32.mrf.mxu3 }
 0x10e   : >> { %4400 = vst [vmem:[#allocation31_spill] sm:$0xff] %v3964_v48  ;;  %v3966_v49 = vpop.f32.mrf.mxu1  ;;  %v2110_v48 = vor.u32 %v2462_v1, %v2107_v61  ;;  %v2125_v1 = vld [vmem:[%s3778_s6 + $0x170] sm:$0xf] }
 0x110   : >> { %v3968_v51 = vpop.f32.mrf.mxu0 }
 0x114   : >> { %v3978_v33 = vpop.f32.mrf.mxu2 }
 0x115   : >> { %4401 = vst [vmem:[#allocation32_spill] sm:$0xff] %v3978_v33  ;;  %v3980_v3 = vpop.f32.mrf.mxu3  ;;  %v2470_v33 = vld [vmem:[%s3778_s6 + $0x188] sm:$0xf0] }
 0x116   : >> { %4402 = vst [vmem:[#allocation33_spill] sm:$0xff] %v3980_v3  ;;  %v1216_v6 = vpop.f32.mrf.mxu1 }
 0x117   : >> { %v1217_v7 = vadd.f32 %v1216_v6, %v3888_v53  ;;  %v2466_v53 = vld [vmem:[%s3778_s6 + $0x16c] sm:$0xf] }
 0x118   : >> { %v1483_v55 = vpop.f32.mrf.mxu0  ;;  %v2122_v63 = vor.u32 %v2466_v53, %v2119_v0  ;;  %v2139_v0 = vld [vmem:[%s3778_s6 + $0x1a4] sm:$0xf0] }
 0x119   : >> { %1255 = vmatmul.bf16.gmra.mxu1 %v2102_v40  ;;  %1344 = vmatmul.bf16.gmra.mxu2 %v2106_v36  ;;  %v2469_v40 = vld [vmem:[%s3778_s6 + $0x180] sm:$0xf0]  ;;  %v2133_v36 = vld [vmem:[%s3778_s6 + $0x178] sm:$0xf] }
 0x11a   : >> { %1433 = vmatmul.bf16.gmra.mxu3 %v2110_v48 }
 0x11b   : >> { %1522 = vmatmul.bf16.gmra.mxu0 %v2114_v35  ;;  %v2127_v35 = vld [vmem:[%s3778_s6 + $0x184] sm:$0xf0] }
 0x11c   : >> { %v1305_v3 = vpop.f32.mrf.mxu2 }
 0x11d   : >> { %v1306_v52 = vadd.f32 %v1305_v3, %v1217_v7  ;;  %v1394_v58 = vpop.f32.mrf.mxu3 }
 0x11e   : >> { %v1218_v61 = vpop.f32.mrf.mxu1 }
 0x11f   : >> { %v1395_v59 = vadd.f32 %v1394_v58, %v1306_v52  ;;  %v1219_v5 = vadd.f32 %v1218_v61, %v3896_v57  ;;  %v2126_v52 = vor.u32 %v2469_v40, %v2125_v1  ;;  %v2130_v57 = vor.u32 %v2467_v8, %v2127_v35  ;;  %v2145_v1 = vld [vmem:[%s3778_s6 + $0x198] sm:$0xf]  ;;  %v2474_v40 = vld [vmem:[%s3778_s6 + $0x1a8] sm:$0xf0]  ;;  %v2472_v35 = vld [vmem:[%s3778_s6 + $0x19c] sm:$0xf] }
 0x120   : >> { %v1485_v43 = vpop.f32.mrf.mxu0  ;;  %v2134_v61 = vor.u32 %v2470_v33, %v2133_v36  ;;  %v2153_v36 = vld [vmem:[%s3778_s6 + $0x1a0] sm:$0xf] }
 0x121   : >> { %v1484_v6 = vadd.f32 %v1483_v55, %v1395_v59 }
 0x123   : >> { %v3990_v31 = vadd.f32 %v3455_v31, %v1484_v6   ;;  %v2471_v6 = vld [vmem:[%s3778_s6 + $0x194] sm:$0xf] }
 0x124   : >> { %v1307_v9 = vpop.f32.mrf.mxu2 }
 0x125   : >> { %4403 = vst [vmem:[#allocation34_spill] sm:$0xff] %v3990_v31  ;;  %v1308_v7 = vadd.f32 %v1307_v9, %v1219_v5  ;;  %v1396_v3 = vpop.f32.mrf.mxu3 }
 0x126   : >> { %v1221_v58 = vpop.f32.mrf.mxu1 }
 0x127   : >> { %v1397_v55 = vadd.f32 %v1396_v3, %v1308_v7  ;;  %v1222_v59 = vadd.f32 %v1221_v58, %v3912_v41  ;;  %v2475_v7 = vld [vmem:[%s3778_s6 + $0x1b0] sm:$0xf0] }
 0x128   : >> { %v1488_v10 = vpop.f32.mrf.mxu0 }
 0x129   : >> { %v1486_v62 = vadd.f32 %v1485_v43, %v1397_v55  ;;  %1260 = vmatmul.bf16.gmra.mxu1 %v2122_v63  ;;  %1349 = vmatmul.bf16.gmra.mxu2 %v2126_v52 }
 0x12a   : >> { %1438 = vmatmul.bf16.gmra.mxu3 %v2130_v57  ;;  %v2142_v57 = vor.u32 %v2471_v6, %v2139_v0 }
 0x12b   : >> { %1527 = vmatmul.bf16.gmra.mxu0 %v2134_v61  ;;  %v3997_v30 = vadd.f32 %v3451_v30, %v1486_v62   ;;  %v2146_v61 = vor.u32 %v2474_v40, %v2145_v1  ;;  %v2476_v1 = vld [vmem:[%s3778_s6 + $0x1bc] sm:$0xf]  ;;  %v2159_v40 = vld [vmem:[%s3778_s6 + $0x1cc] sm:$0xf0] }
 0x12c   : >> { %v1310_v8 = vpop.f32.mrf.mxu2 }
 0x12d   : >> { %4404 = vst [vmem:[#allocation35_spill] sm:$0xff] %v3997_v30  ;;  %v1311_v9 = vadd.f32 %v1310_v8, %v1222_v59  ;;  %v1399_v31 = vpop.f32.mrf.mxu3  ;;  %v2147_v30 = vld [vmem:[%s3778_s6 + $0x1ac] sm:$0xf0]  ;;  %v2154_v59 = vor.u32 %v2475_v7, %v2153_v36  ;;  %v2477_v36 = vld [vmem:[%s3778_s6 + $0x1c4] sm:$0xf] }
 0x12e   : >> { %v1223_v41 = vpop.f32.mrf.mxu1  ;;  %v2173_v7 = vld [vmem:[%s3778_s6 + $0x1c8] sm:$0xf] }
 0x12f   : >> { %v1400_v33 = vadd.f32 %v1399_v31, %v1311_v9  ;;  %v1224_v5 = vadd.f32 %v1223_v41, %v3920_v45  ;;  %v2150_v45 = vor.u32 %v2472_v35, %v2147_v30  ;;  %v2165_v35 = vld [vmem:[%s3778_s6 + $0x1c0] sm:$0xf]  ;;  %v2479_v30 = vld [vmem:[%s3778_s6 + $0x1d0] sm:$0xf0] }
 0x130   : >> { %v1490_v43 = vpop.f32.mrf.mxu0 }
 0x131   : >> { %v1489_v63 = vadd.f32 %v1488_v10, %v1400_v33 }
 0x133   : >> { %v4006_v29 = vadd.f32 %v3447_v29, %v1489_v63  }
 0x134   : >> { %v1312_v3 = vpop.f32.mrf.mxu2 }
 0x135   : >> { %v4405_v62 = vmov %v4006_v29  ;;  %v1313_v52 = vadd.f32 %v1312_v3, %v1224_v5  ;;  %v1401_v58 = vpop.f32.mrf.mxu3  ;;  %v2480_v3 = vld [vmem:[%s3778_s6 + $0x1d8] sm:$0xf0] }
 0x136   : >> { %v1226_v55 = vpop.f32.mrf.mxu1 }
 0x137   : >> { %v1402_v10 = vadd.f32 %v1401_v58, %v1313_v52  ;;  %v1227_v8 = vadd.f32 %v1226_v55, %v3936_v37  ;;  %v2162_v55 = vor.u32 %v2476_v1, %v2159_v40  ;;  %v2481_v1 = vld [vmem:[%s3778_s6 + $0x1e4] sm:$0xf]  ;;  %v2179_v40 = vld [vmem:[%s3778_s6 + $0x1f4] sm:$0xf0] }
 0x138   : >> { %v1493_v9 = vpop.f32.mrf.mxu0 }
 0x139   : >> { %v1491_v31 = vadd.f32 %v1490_v43, %v1402_v10  ;;  %1265 = vmatmul.bf16.gmra.mxu1 %v2142_v57  ;;  %1354 = vmatmul.bf16.gmra.mxu2 %v2146_v61  ;;  %v2174_v10 = vor.u32 %v2480_v3, %v2173_v7  ;;  %v2485_v7 = vld [vmem:[%s3778_s6 + $0x200] sm:$0xf0] }
 0x13a   : >> { %1443 = vmatmul.bf16.gmra.mxu3 %v2150_v45  ;;  %v2166_v45 = vor.u32 %v2479_v30, %v2165_v35  ;;  %v2185_v35 = vld [vmem:[%s3778_s6 + $0x1e8] sm:$0xf]  ;;  %v2484_v30 = vld [vmem:[%s3778_s6 + $0x1f8] sm:$0xf0] }
 0x13b   : >> { %1532 = vmatmul.bf16.gmra.mxu0 %v2154_v59  ;;  %v4013_v28 = vadd.f32 %v3443_v28, %v1491_v31  }
 0x13c   : >> { %v1315_v29 = vpop.f32.mrf.mxu2 }
 0x13d   : >> { %v4406_v41 = vmov %v4013_v28  ;;  %v1316_v33 = vadd.f32 %v1315_v29, %v1227_v8  ;;  %v1404_v37 = vpop.f32.mrf.mxu3  ;;  %v2167_v28 = vld [vmem:[%s3778_s6 + $0x1d4] sm:$0xf0] }
 0x13e   : >> { %v1228_v5 = vpop.f32.mrf.mxu1 }
 0x13f   : >> { %v1405_v63 = vadd.f32 %v1404_v37, %v1316_v33  ;;  %v1229_v43 = vadd.f32 %v1228_v5, %v3944_v47  ;;  %v2170_v47 = vor.u32 %v2477_v36, %v2167_v28  ;;  %v2482_v36 = vld [vmem:[%s3778_s6 + $0x1ec] sm:$0xf]  ;;  %v2193_v28 = vld [vmem:[%s3778_s6 + $0x1f0] sm:$0xf] }
 0x140   : >> { %v1495_v6 = vpop.f32.mrf.mxu0 }
 0x141   : >> { %v1494_v0 = vadd.f32 %v1493_v9, %v1405_v63 }
 0x143   : >> { %v4022_v27 = vadd.f32 %v3439_v27, %v1494_v0  }
 0x144   : >> { %v1317_v58 = vpop.f32.mrf.mxu2 }
 0x145   : >> { %v4407_v52 = vmov %v4022_v27  ;;  %v1318_v57 = vadd.f32 %v1317_v58, %v1229_v43  ;;  %v1406_v61 = vpop.f32.mrf.mxu3 }
 0x146   : >> { %v1231_v59 = vpop.f32.mrf.mxu1 }
 0x147   : >> { %v1407_v8 = vadd.f32 %v1406_v61, %v1318_v57  ;;  %v1232_v9 = vadd.f32 %v1231_v59, %v3960_v4 }
 0x148   : >> { %v1498_v31 = vpop.f32.mrf.mxu0 }
 0x149   : >> { %v1496_v29 = vadd.f32 %v1495_v6, %v1407_v8  ;;  %1270 = vmatmul.bf16.gmra.mxu1 %v2162_v55  ;;  %1359 = vmatmul.bf16.gmra.mxu2 %v2166_v45  ;;  %v2182_v55 = vor.u32 %v2481_v1, %v2179_v40  ;;  %v2186_v45 = vor.u32 %v2484_v30, %v2185_v35  ;;  %v2205_v1 = vld [vmem:[%s3778_s6 + $0x210] sm:$0xf]  ;;  %v2489_v40 = vld [vmem:[%s3778_s6 + $0x220] sm:$0xf0]  ;;  %v2487_v35 = vld [vmem:[%s3778_s6 + $0x214] sm:$0xf] }
 0x14a   : >> { %1448 = vmatmul.bf16.gmra.mxu3 %v2170_v47  ;;  %v2194_v47 = vor.u32 %v2485_v7, %v2193_v28  ;;  %v2213_v30 = vld [vmem:[%s3778_s6 + $0x218] sm:$0xf] }
 0x14b   : >> { %1537 = vmatmul.bf16.gmra.mxu0 %v2174_v10  ;;  %v4029_v26 = vadd.f32 %v3435_v26, %v1496_v29  }
 0x14c   : >> { %v1320_v27 = vpop.f32.mrf.mxu2 }
 0x14d   : >> { %v4408_v33 = vmov %v4029_v26  ;;  %v1321_v37 = vadd.f32 %v1320_v27, %v1232_v9  ;;  %v1409_v4 = vpop.f32.mrf.mxu3  ;;  %v2187_v26 = vld [vmem:[%s3778_s6 + $0x1fc] sm:$0xf0] }
 0x14e   : >> { %v1233_v5 = vpop.f32.mrf.mxu1 }
 0x14f   : >> { %v1410_v63 = vadd.f32 %v1409_v4, %v1321_v37  ;;  %v1234_v43 = vadd.f32 %v1233_v5, %v3968_v51  ;;  %v2190_v51 = vor.u32 %v2482_v36, %v2187_v26  ;;  %v2490_v26 = vld [vmem:[%s3778_s6 + $0x228] sm:$0xf0] }
 0x150   : >> { %v1500_v6 = vpop.f32.mrf.mxu0 }
 0x151   : >> { %v1499_v0 = vadd.f32 %v1498_v31, %v1410_v63 }
 0x153   : >> { %v4038_v25 = vadd.f32 %v3431_v25, %v1499_v0   ;;  %v2199_v0 = vld [vmem:[%s3778_s6 + $0x21c] sm:$0xf0] }
 0x154   : >> { %v1322_v3 = vpop.f32.mrf.mxu2 }
 0x155   : >> { %v4409_v58 = vmov %v4038_v25  ;;  %v1323_v57 = vadd.f32 %v1322_v3, %v1234_v43  ;;  %v1411_v61 = vpop.f32.mrf.mxu3 }
 0x156   : >> { %v1236_v59 = vpop.f32.mrf.mxu1 }
 0x157   : >> { %v1412_v10 = vadd.f32 %v1411_v61, %v1323_v57  ;;  %v1237_v25 = vadd.f32 %v1236_v59, %v3886_v50  ;;  %v2207_v50 = vld [vmem:[%s3778_s6 + $0x224] sm:$0xf0]  ;;  %v2206_v61 = vor.u32 %v2489_v40, %v2205_v1  ;;  %v2214_v59 = vor.u32 %v2490_v26, %v2213_v30  ;;  %v2233_v1 = vld [vmem:[%s3778_s6 + $0x240] sm:$0xf] }
 0x158   : >> { %v1503_v8 = vpop.f32.mrf.mxu0 }
 0x159   : >> { %v1501_v9 = vadd.f32 %v1500_v6, %v1412_v10  ;;  %1275 = vmatmul.bf16.gmra.mxu1 %v2182_v55  ;;  %1364 = vmatmul.bf16.gmra.mxu2 %v2186_v45  ;;  %v2486_v6 = vld [vmem:[%s3778_s6 + $0x20c] sm:$0xf]  ;;  %v2210_v45 = vor.u32 %v2487_v35, %v2207_v50  ;;  %v2495_v35 = vld [vmem:[%s3778_s6 + $0x250] sm:$0xf0] }
 0x15a   : >> { %1453 = vmatmul.bf16.gmra.mxu3 %v2190_v51  ;;  %v2202_v57 = vor.u32 %v2486_v6, %v2199_v0  ;;  %v2494_v6 = vld [vmem:[%s3778_s6 + $0x248] sm:$0xf0]  ;;  %v2492_v0 = vld [vmem:[%s3778_s6 + $0x23c] sm:$0xf] }
 0x15b   : >> { %1542 = vmatmul.bf16.gmra.mxu0 %v2194_v47  ;;  %v4044_v24 = vadd.f32 %v3427_v24, %v1501_v9  }
 0x15c   : >> { %v1325_v31 = vpop.f32.mrf.mxu2 }
 0x15d   : >> { %v4410_v37 = vmov %v4044_v24  ;;  %v1326_v29 = vadd.f32 %v1325_v31, %v1237_v25  ;;  %v1414_v27 = vpop.f32.mrf.mxu3 }
 0x15e   : >> { %v1238_v4 = vpop.f32.mrf.mxu1 }
 0x15f   : >> { %v1415_v5 = vadd.f32 %v1414_v27, %v1326_v29  ;;  %v1239_v24 = vadd.f32 %v1238_v4, %v3894_v56 }
 0x160   : >> { %v1505_v63 = vpop.f32.mrf.mxu0 }
 0x161   : >> { %v1504_v43 = vadd.f32 %v1503_v8, %v1415_v5  ;;  %v2491_v5 = vld [vmem:[%s3778_s6 + $0x234] sm:$0xf] }
 0x163   : >> { %v4053_v23 = vadd.f32 %v3423_v23, %v1504_v43   ;;  %v2225_v43 = vld [vmem:[%s3778_s6 + $0x238] sm:$0xf] }
 0x164   : >> { %v1327_v28 = vpop.f32.mrf.mxu2 }
 0x165   : >> { %v4411_v36 = vmov %v4053_v23  ;;  %v1328_v7 = vadd.f32 %v1327_v28, %v1239_v24  ;;  %v1416_v3 = vpop.f32.mrf.mxu3  ;;  %v2226_v28 = vor.u32 %v2494_v6, %v2225_v43  ;;  %v2500_v43 = vld [vmem:[%s3778_s6 + $0x278] sm:$0xf0] }
 0x166   : >> { %v1241_v55 = vpop.f32.mrf.mxu1 }
 0x167   : >> { %v1417_v51 = vadd.f32 %v1416_v3, %v1328_v7  ;;  %v1242_v23 = vadd.f32 %v1241_v55, %v3910_v38  ;;  %v2227_v38 = vld [vmem:[%s3778_s6 + $0x24c] sm:$0xf0] }
 0x168   : >> { %v1508_v47 = vpop.f32.mrf.mxu0  ;;  %v2230_v3 = vor.u32 %v2492_v0, %v2227_v38 }
 0x169   : >> { %v1506_v10 = vadd.f32 %v1505_v63, %v1417_v51  ;;  %1280 = vmatmul.bf16.gmra.mxu1 %v2202_v57  ;;  %1369 = vmatmul.bf16.gmra.mxu2 %v2206_v61  ;;  %v2219_v63 = vld [vmem:[%s3778_s6 + $0x244] sm:$0xf0]  ;;  %v2234_v57 = vor.u32 %v2495_v35, %v2233_v1 }
 0x16a   : >> { %1458 = vmatmul.bf16.gmra.mxu3 %v2210_v45  ;;  %v2222_v26 = vor.u32 %v2491_v5, %v2219_v63  ;;  %v2253_v5 = vld [vmem:[%s3778_s6 + $0x268] sm:$0xf] }
 0x16b   : >> { %1547 = vmatmul.bf16.gmra.mxu0 %v2214_v59  ;;  %v4060_v22 = vadd.f32 %v3419_v22, %v1506_v10  }
 0x16c   : >> { %v1330_v8 = vpop.f32.mrf.mxu2 }
 0x16d   : >> { %v4412_v56 = vmov %v4060_v22  ;;  %v1331_v9 = vadd.f32 %v1330_v8, %v1242_v23  ;;  %v1419_v25 = vpop.f32.mrf.mxu3 }
 0x16e   : >> { %v1243_v31 = vpop.f32.mrf.mxu1 }
 0x16f   : >> { %v1420_v29 = vadd.f32 %v1419_v25, %v1331_v9  ;;  %v1244_v22 = vadd.f32 %v1243_v31, %v3918_v44  ;;  %v2496_v25 = vld [vmem:[%s3778_s6 + $0x25c] sm:$0xf]  ;;  %v2239_v31 = vld [vmem:[%s3778_s6 + $0x26c] sm:$0xf0] }
 0x170   : >> { %v1510_v27 = vpop.f32.mrf.mxu0  ;;  %v2242_v38 = vor.u32 %v2496_v25, %v2239_v31 }
 0x171   : >> { %v1509_v4 = vadd.f32 %v1508_v47, %v1420_v29  ;;  %v2245_v29 = vld [vmem:[%s3778_s6 + $0x260] sm:$0xf] }
 0x173   : >> { %v4069_v21 = vadd.f32 %v3415_v21, %v1509_v4   ;;  %v2497_v4 = vld [vmem:[%s3778_s6 + $0x264] sm:$0xf] }
 0x174   : >> { %v1332_v24 = vpop.f32.mrf.mxu2 }
 0x175   : >> { %v4413_v40 = vmov %v4069_v21  ;;  %v1333_v50 = vadd.f32 %v1332_v24, %v1244_v22  ;;  %v1421_v30 = vpop.f32.mrf.mxu3 }
 0x176   : >> { %v1246_v7 = vpop.f32.mrf.mxu1 }
 0x177   : >> { %v1422_v61 = vadd.f32 %v1421_v30, %v1333_v50  ;;  %v1247_v21 = vadd.f32 %v1246_v7, %v3934_v32  ;;  %v2247_v32 = vld [vmem:[%s3778_s6 + $0x274] sm:$0xf0]  ;;  %v2254_v50 = vor.u32 %v2500_v43, %v2253_v5 }
 0x178   : >> { %v1513_v55 = vpop.f32.mrf.mxu0  ;;  %v2250_v24 = vor.u32 %v2497_v4, %v2247_v32 }
 0x179   : >> { %v1511_v45 = vadd.f32 %v1510_v27, %v1422_v61  ;;  %1285 = vmatmul.bf16.gmra.mxu1 %v2222_v26  ;;  %1374 = vmatmul.bf16.gmra.mxu2 %v2226_v28  ;;  %v2499_v27 = vld [vmem:[%s3778_s6 + $0x270] sm:$0xf0] }
 0x17a   : >> { %1463 = vmatmul.bf16.gmra.mxu3 %v2230_v3  ;;  %v2246_v1 = vor.u32 %v2499_v27, %v2245_v29 }
 0x17b   : >> { %1552 = vmatmul.bf16.gmra.mxu0 %v2234_v57  ;;  %v4076_v20 = vadd.f32 %v3411_v20, %v1511_v45  }
 0x17c   : >> { %v1335_v59 = vpop.f32.mrf.mxu2 }
 0x17d   : >> { %v4414_v44 = vmov %v4076_v20  ;;  %v1336_v51 = vadd.f32 %v1335_v59, %v1247_v21  ;;  %v1424_v47 = vpop.f32.mrf.mxu3 }
 0x17e   : >> { %v1248_v10 = vpop.f32.mrf.mxu1 }
 0x17f   : >> { %v1425_v23 = vadd.f32 %v1424_v47, %v1336_v51  ;;  %v1249_v20 = vadd.f32 %v1248_v10, %v3942_v46 }
 0x180   : >> { %v1515_v8 = vpop.f32.mrf.mxu0 }
 0x181   : >> { %v1514_v9 = vadd.f32 %v1513_v55, %v1425_v23 }
 0x183   : >> { %v4085_v19 = vadd.f32 %v3407_v19, %v1514_v9  }
 0x184   : >> { %v1337_v6 = vpop.f32.mrf.mxu2 }
 0x185   : >> { %v4415_v63 = vmov %v4085_v19  ;;  %v1338_v0 = vadd.f32 %v1337_v6, %v1249_v20  ;;  %v1426_v22 = vpop.f32.mrf.mxu3 }
 0x186   : >> { %v1251_v35 = vpop.f32.mrf.mxu1 }
 0x187   : >> { %v1427_v30 = vadd.f32 %v1426_v22, %v1338_v0  ;;  %v1252_v19 = vadd.f32 %v1251_v35, %v3958_v2 }
 0x188   : >> { %v1518_v26 = vpop.f32.mrf.mxu0 }
 0x189   : >> { %v1516_v28 = vadd.f32 %v1515_v8, %v1427_v30  ;;  %1290 = vmatmul.bf16.gmra.mxu1 %v2242_v38  ;;  %1379 = vmatmul.bf16.gmra.mxu2 %v2246_v1 }
 0x18a   : >> { %1468 = vmatmul.bf16.gmra.mxu3 %v2250_v24 }
 0x18b   : >> { %1557 = vmatmul.bf16.gmra.mxu0 %v2254_v50  ;;  %v4092_v18 = vadd.f32 %v3403_v18, %v1516_v28  }
 0x18c   : >> { %v1340_v7 = vpop.f32.mrf.mxu2 }
 0x18d   : >> { %v4416_v46 = vmov %v4092_v18  ;;  %v1341_v3 = vadd.f32 %v1340_v7, %v1252_v19  ;;  %v1429_v57 = vpop.f32.mrf.mxu3 }
 0x18e   : >> { %v1253_v61 = vpop.f32.mrf.mxu1 }
 0x18f   : >> { %v1430_v55 = vadd.f32 %v1429_v57, %v1341_v3  ;;  %v1254_v51 = vadd.f32 %v1253_v61, %v3966_v49 }
 0x190   : >> { %v1520_v45 = vpop.f32.mrf.mxu0 }
 0x191   : >> { %v1519_v21 = vadd.f32 %v1518_v26, %v1430_v55 }
 0x193   : >> { %v4096_v17 = vadd.f32 %v3399_v17, %v1519_v21  }
 0x194   : >> { %v1342_v47 = vpop.f32.mrf.mxu2 }
 0x195   : >> { %v4417_v59 = vmov %v4096_v17  ;;  %v1343_v10 = vadd.f32 %v1342_v47, %v1254_v51  ;;  %v1431_v23 = vpop.f32.mrf.mxu3 }
 0x196   : >> { %v1256_v8 = vpop.f32.mrf.mxu1 }
 0x197   : >> { %v1432_v9 = vadd.f32 %v1431_v23, %v1343_v10  ;;  %v1257_v2 = vadd.f32 %v1256_v8, %v3890_v54 }
 0x198   : >> { %v1523_v18 = vpop.f32.mrf.mxu0 }
 0x199   : >> { %v1521_v25 = vadd.f32 %v1520_v45, %v1432_v9 }
 0x19b   : >> { %v4100_v16 = vadd.f32 %v3395_v16, %v1521_v25  }
 0x19c   : >> { %v1345_v31 = vpop.f32.mrf.mxu2 }
 0x19d   : >> { %v4418_v32 = vmov %v4100_v16  ;;  %v1346_v29 = vadd.f32 %v1345_v31, %v1257_v2  ;;  %v1434_v27 = vpop.f32.mrf.mxu3  ;;  %v4424_v2 = vld [vmem:[#allocation28_spill] sm:$0xff] }
 0x19e   : >> { %v1258_v4 = vpop.f32.mrf.mxu1 }
 0x19f   : >> { %v1435_v20 = vadd.f32 %v1434_v27, %v1346_v29  ;;  %v1259_v43 = vadd.f32 %v1258_v4, %v3906_v34 }
 0x1a0   : >> { %v1525_v17 = vpop.f32.mrf.mxu0 }
 0x1a1   : >> { %v1524_v5 = vadd.f32 %v1523_v18, %v1435_v20 }
 0x1a3   : >> { %v4104_v15 = vadd.f32 %v3391_v15, %v1524_v5  }
 0x1a4   : >> { %v1347_v6 = vpop.f32.mrf.mxu2 }
 0x1a5   : >> { %v4419_v49 = vmov %v4104_v15  ;;  %v1348_v0 = vadd.f32 %v1347_v6, %v1259_v43  ;;  %v1436_v22 = vpop.f32.mrf.mxu3  ;;  %v4427_v6 = vld [vmem:[#allocation30_spill] sm:$0xff] }
 0x1a6   : >> { %v1261_v38 = vpop.f32.mrf.mxu1 }
 0x1a7   : >> { %v1437_v1 = vadd.f32 %v1436_v22, %v1348_v0  ;;  %v1262_v24 = vadd.f32 %v1261_v38, %v3914_v42 }
 0x1a8   : >> { %v1528_v16 = vpop.f32.mrf.mxu0 }
 0x1a9   : >> { %v1526_v35 = vadd.f32 %v1525_v17, %v1437_v1 }
 0x1ab   : >> { %v4108_v14 = vadd.f32 %v3387_v14, %v1526_v35  }
 0x1ac   : >> { %v1350_v50 = vpop.f32.mrf.mxu2 }
 0x1ad   : >> { %v4420_v54 = vmov %v4108_v14  ;;  %v1351_v30 = vadd.f32 %v1350_v50, %v1262_v24  ;;  %v1439_v26 = vpop.f32.mrf.mxu3  ;;  %v4428_v50 = vld [vmem:[#allocation21_spill] sm:$0xff] }
 0x1ae   : >> { %v1263_v28 = vpop.f32.mrf.mxu1 }
 0x1af   : >> { %v1440_v19 = vadd.f32 %v1439_v26, %v1351_v30  ;;  %v1264_v3 = vadd.f32 %v1263_v28, %v3930_v60  ;;  %v4430_v30 = vld [vmem:[#allocation32_spill] sm:$0xff] }
 0x1b0   : >> { %v1530_v15 = vpop.f32.mrf.mxu0 }
 0x1b1   : >> { %v1529_v7 = vadd.f32 %v1528_v16, %v1440_v19 }
 0x1b3   : >> { %v4112_v13 = vadd.f32 %v3383_v13, %v1529_v7  }
 0x1b4   : >> { %v1352_v57 = vpop.f32.mrf.mxu2 }
 0x1b5   : >> { %v4421_v34 = vmov %v4112_v13  ;;  %v1353_v61 = vadd.f32 %v1352_v57, %v1264_v3  ;;  %v1441_v55 = vpop.f32.mrf.mxu3 }
 0x1b6   : >> { %v1266_v45 = vpop.f32.mrf.mxu1 }
 0x1b7   : >> { %v1442_v21 = vadd.f32 %v1441_v55, %v1353_v61  ;;  %v1267_v47 = vadd.f32 %v1266_v45, %v3938_v39  ;;  %v4425_v39 = vld [vmem:[#allocation22_spill] sm:$0xff]  ;;  %v4431_v45 = vld [vmem:[#allocation20_spill] sm:$0xff] }
 0x1b8   : >> { %v1533_v14 = vpop.f32.mrf.mxu0 }
 0x1b9   : >> { %v1531_v51 = vadd.f32 %v1530_v15, %v1442_v21  ;;  %v4434_v21 = vld [vmem:[#allocation23_spill] sm:$0xff] }
 0x1bb   : >> { %v4116_v12 = vadd.f32 %v3379_v12, %v1531_v51  }
 0x1bc   : >> { %v1355_v10 = vpop.f32.mrf.mxu2 }
 0x1bd   : >> { %v4422_v42 = vmov %v4116_v12  ;;  %v1356_v23 = vadd.f32 %v1355_v10, %v1267_v47  ;;  %v1444_v8 = vpop.f32.mrf.mxu3 }
 0x1be   : >> { %v1268_v9 = vpop.f32.mrf.mxu1 }
 0x1bf   : >> { %v1445_v18 = vadd.f32 %v1444_v8, %v1356_v23  ;;  %v1269_v31 = vadd.f32 %v1268_v9, %v4424_v2  ;;  %v4435_v2 = vld [vmem:[#allocation19_spill] sm:$0xff] }
 0x1c0   : >> { %v1535_v13 = vpop.f32.mrf.mxu0 }
 0x1c1   : >> { %v1534_v25 = vadd.f32 %v1533_v14, %v1445_v18 }
 0x1c3   : >> { %v4120_v11 = vadd.f32 %v3375_v11, %v1534_v25  }
 0x1c4   : >> { %v1357_v29 = vpop.f32.mrf.mxu2 }
 0x1c5   : >> { %v4423_v60 = vmov %v4120_v11  ;;  %v1358_v27 = vadd.f32 %v1357_v29, %v1269_v31  ;;  %v1446_v4 = vpop.f32.mrf.mxu3  ;;  %v4438_v31 = vld [vmem:[#allocation24_spill] sm:$0xff] }
 0x1c6   : >> { %v1271_v20 = vpop.f32.mrf.mxu1 }
 0x1c7   : >> { %v1447_v17 = vadd.f32 %v1446_v4, %v1358_v27  ;;  %v1272_v0 = vadd.f32 %v1271_v20, %v4427_v6  ;;  %v4439_v6 = vld [vmem:[#allocation18_spill] sm:$0xff] }
 0x1c8   : >> { %v1538_v12 = vpop.f32.mrf.mxu0 }
 0x1c9   : >> { %v1536_v5 = vadd.f32 %v1535_v13, %v1447_v17 }
 0x1cb   : >> { %v4124_v10 = vadd.f32 %v4425_v39, %v1536_v5  }
 0x1cc   : >> { %v1360_v22 = vpop.f32.mrf.mxu2 }
 0x1cd   : >> { %v4426_v43 = vmov %v4124_v10  ;;  %v1361_v38 = vadd.f32 %v1360_v22, %v1272_v0  ;;  %v1449_v1 = vpop.f32.mrf.mxu3  ;;  %v4442_v0 = vld [vmem:[#allocation25_spill] sm:$0xff] }
 0x1ce   : >> { %v1273_v16 = vpop.f32.mrf.mxu1 }
 0x1cf   : >> { %v1450_v35 = vadd.f32 %v1449_v1, %v1361_v38  ;;  %v1274_v26 = vadd.f32 %v1273_v16, %v4430_v30 }
 0x1d0   : >> { %v1540_v11 = vpop.f32.mrf.mxu0 }
 0x1d1   : >> { %v1539_v24 = vadd.f32 %v1538_v12, %v1450_v35 }
 0x1d3   : >> { %v4128_v9 = vadd.f32 %v4428_v50, %v1539_v24  }
 0x1d4   : >> { %v1362_v28 = vpop.f32.mrf.mxu2 }
 0x1d5   : >> { %v4429_v57 = vmov %v4128_v9  ;;  %v1363_v19 = vadd.f32 %v1362_v28, %v1274_v26  ;;  %v1451_v15 = vpop.f32.mrf.mxu3  ;;  %v4443_v26 = vld [vmem:[#allocation17_spill] sm:$0xff]  ;;  %v4446_v28 = vld [vmem:[#allocation26_spill] sm:$0xff] }
 0x1d6   : >> { %v1276_v7 = vpop.f32.mrf.mxu1 }
 0x1d7   : >> { %v1452_v3 = vadd.f32 %v1451_v15, %v1363_v19  ;;  %v1277_v14 = vadd.f32 %v1276_v7, %v4434_v21 }
 0x1d8   : >> { %v1543_v61 = vpop.f32.mrf.mxu0 }
 0x1d9   : >> { %v1541_v55 = vadd.f32 %v1540_v11, %v1452_v3 }
 0x1db   : >> { %v4132_v8 = vadd.f32 %v4431_v45, %v1541_v55  }
 0x1dc   : >> { %v1365_v47 = vpop.f32.mrf.mxu2 }
 0x1dd   : >> { %4432 = vst [vmem:[#allocation36_spill] sm:$0xff] %v4132_v8  ;;  %v4433_v51 = vmov %v4132_v8  ;;  %v1366_v10 = vadd.f32 %v1365_v47, %v1277_v14  ;;  %v1454_v23 = vpop.f32.mrf.mxu3  ;;  %v4447_v47 = vld [vmem:[#allocation16_spill] sm:$0xff] }
 0x1de   : >> { %v1278_v18 = vpop.f32.mrf.mxu1 }
 0x1df   : >> { %v1455_v13 = vadd.f32 %v1454_v23, %v1366_v10  ;;  %v1279_v29 = vadd.f32 %v1278_v18, %v4438_v31  ;;  %v4450_v10 = vld [vmem:[#allocation27_spill] sm:$0xff] }
 0x1e0   : >> { %v1545_v9 = vpop.f32.mrf.mxu0 }
 0x1e1   : >> { %v1544_v25 = vadd.f32 %v1543_v61, %v1455_v13 }
 0x1e3   : >> { %v4136_v7 = vadd.f32 %v4435_v2, %v1544_v25  }
 0x1e4   : >> { %v1367_v27 = vpop.f32.mrf.mxu2 }
 0x1e5   : >> { %4436 = vst [vmem:[#allocation37_spill] sm:$0xff] %v4136_v7  ;;  %v4437_v39 = vmov %v4136_v7  ;;  %v1368_v4 = vadd.f32 %v1367_v27, %v1279_v29  ;;  %v1456_v20 = vpop.f32.mrf.mxu3  ;;  %v4451_v29 = vld [vmem:[#allocation15_spill] sm:$0xff]  ;;  %v4454_v27 = vld [vmem:[#allocation29_spill] sm:$0xff] }
 0x1e6   : >> { %v1281_v17 = vpop.f32.mrf.mxu1 }
 0x1e7   : >> { %v1457_v12 = vadd.f32 %v1456_v20, %v1368_v4  ;;  %v1282_v22 = vadd.f32 %v1281_v17, %v4442_v0 }
 0x1e8   : >> { %v1548_v8 = vpop.f32.mrf.mxu0 }
 0x1e9   : >> { %v1546_v5 = vadd.f32 %v1545_v9, %v1457_v12 }
 0x1eb   : >> { %v4140_v6 = vadd.f32 %v4439_v6, %v1546_v5  }
 0x1ec   : >> { %v1370_v1 = vpop.f32.mrf.mxu2 }
 0x1ed   : >> { %4440 = vst [vmem:[#allocation38_spill] sm:$0xff] %v4140_v6  ;;  %v4441_v38 = vmov %v4140_v6  ;;  %v1371_v16 = vadd.f32 %v1370_v1, %v1282_v22  ;;  %v1459_v35 = vpop.f32.mrf.mxu3  ;;  %v4455_v22 = vld [vmem:[#allocation14_spill] sm:$0xff]  ;;  %v4458_v1 = vld [vmem:[#allocation31_spill] sm:$0xff] }
 0x1ee   : >> { %v1283_v11 = vpop.f32.mrf.mxu1 }
 0x1ef   : >> { %v1460_v24 = vadd.f32 %v1459_v35, %v1371_v16  ;;  %v1284_v19 = vadd.f32 %v1283_v11, %v4446_v28 }
 0x1f0   : >> { %v1550_v50 = vpop.f32.mrf.mxu0 }
 0x1f1   : >> { %v1549_v30 = vadd.f32 %v1548_v8, %v1460_v24 }
 0x1f3   : >> { %v4144_v5 = vadd.f32 %v4443_v26, %v1549_v30  }
 0x1f4   : >> { %v1372_v15 = vpop.f32.mrf.mxu2 }
 0x1f5   : >> { %4444 = vst [vmem:[#allocation39_spill] sm:$0xff] %v4144_v5  ;;  %v4445_v61 = vmov %v4144_v5  ;;  %v1373_v7 = vadd.f32 %v1372_v15, %v1284_v19  ;;  %v1461_v3 = vpop.f32.mrf.mxu3 }
 0x1f6   : >> { %v1286_v55 = vpop.f32.mrf.mxu1 }
 0x1f7   : >> { %v1462_v45 = vadd.f32 %v1461_v3, %v1373_v7  ;;  %v1287_v23 = vadd.f32 %v1286_v55, %v4450_v10  ;;  %v4459_v7 = vld [vmem:[#allocation13_spill] sm:$0xff] }
 0x1f8   : >> { %v1553_v14 = vpop.f32.mrf.mxu0 }
 0x1f9   : >> { %v1551_v21 = vadd.f32 %v1550_v50, %v1462_v45 }
 0x1fb   : >> { %v4148_v4 = vadd.f32 %v4447_v47, %v1551_v21  }
 0x1fc   : >> { %v1375_v18 = vpop.f32.mrf.mxu2 }
 0x1fd   : >> { %4448 = vst [vmem:[#allocation40_spill] sm:$0xff] %v4148_v4  ;;  %v4449_v48 = vmov %v4148_v4  ;;  %v1376_v13 = vadd.f32 %v1375_v18, %v1287_v23  ;;  %v1464_v9 = vpop.f32.mrf.mxu3 }
 0x1fe   : >> { %v1288_v25 = vpop.f32.mrf.mxu1 }
 0x1ff   : >> { %v1465_v2 = vadd.f32 %v1464_v9, %v1376_v13  ;;  %v1289_v20 = vadd.f32 %v1288_v25, %v4454_v27  ;;  %v4463_v13 = vld [vmem:[#allocation12_spill] sm:$0xff]  ;;  %v4479_v9 = vmov %v4429_v57  ;;  %v4495_v25 = vmov %v4409_v58 }
 0x200   : >> { %v1555_v17 = vpop.f32.mrf.mxu0  ;;  %v4497_v27 = vmov %v4407_v52 }
 0x201   : >> { %v1554_v31 = vadd.f32 %v1553_v14, %v1465_v2  ;;  %v4508_v27 = vld [vmem:[#allocation39_spill] sm:$0xff] (%p4169_p1) }
 0x203   : >> { %v4152_v3 = vadd.f32 %v4451_v29, %v1554_v31   ;;  %v4499_v29 = vmov %v4405_v62  ;;  %v4501_v31 = vld [vmem:[#allocation34_spill] sm:$0xff] }
 0x204   : >> { %v1377_v12 = vpop.f32.mrf.mxu2 }
 0x205   : >> { %4452 = vst [vmem:[#allocation41_spill] sm:$0xff] %v4152_v3  ;;  %v4453_v35 = vmov %v4152_v3  ;;  %v1378_v8 = vadd.f32 %v1377_v12, %v1289_v20  ;;  %v1466_v5 = vpop.f32.mrf.mxu3  ;;  %v4462_v3 = vld [vmem:[#allocation33_spill] sm:$0xff]  ;;  %v4482_v12 = vmov %v4422_v42  ;;  %v4490_v20 = vmov %v4414_v44 }
 0x206   : >> { %v1291_v6 = vpop.f32.mrf.mxu1 }
 0x207   : >> { %v1467_v0 = vadd.f32 %v1466_v5, %v1378_v8  ;;  %v1292_v16 = vadd.f32 %v1291_v6, %v4458_v1  ;;  %v4475_v5 = vmov %v4445_v61  ;;  %v4476_v6 = vmov %v4441_v38 }
 0x208   : >> { %v1558_v26 = vpop.f32.mrf.mxu0  ;;  %v4478_v8 = vmov %v4433_v51 }
 0x209   : >> { %v1556_v4 = vadd.f32 %v1555_v17, %v1467_v0  ;;  %v4487_v17 = vmov %v4417_v59 }
 0x20b   : >> { %v4156_v2 = vadd.f32 %v4455_v22, %v1556_v4   ;;  %v4474_v4 = vmov %v4449_v48  ;;  %v4492_v22 = vmov %v4412_v56 }
 0x20c   : >> { %v1380_v11 = vpop.f32.mrf.mxu2  ;;  %v4510_v12 = vld [vmem:[#allocation41_spill] sm:$0xff] (%p4169_p1) }
 0x20d   : >> { %4456 = vst [vmem:[#allocation42_spill] sm:$0xff] %v4156_v2  ;;  %v1381_v24 = vadd.f32 %v1380_v11, %v1292_v16  ;;  %v1469_v30 = vpop.f32.mrf.mxu3  ;;  %v4471_v50 = vmov %v4156_v2  ;;  %v4481_v11 = vmov %v4423_v60  ;;  %v4486_v16 = vmov %v4418_v32 }
 0x20e   : >> { %v1293_v19 = vpop.f32.mrf.mxu1  ;;  %v4472_v2 = vmov %v4471_v50 }
 0x20f   : >> { %v1470_v28 = vadd.f32 %v1469_v30, %v1381_v24  ;;  %v1294_v45 = vadd.f32 %v1293_v19, %v4462_v3  ;;  %v4473_v3 = vmov %v4453_v35  ;;  %v4489_v19 = vmov %v4415_v63  ;;  %v4500_v30 = vld [vmem:[#allocation35_spill] sm:$0xff] }
 0x210   : >> { %v1560_v23 = vpop.f32.mrf.mxu0  ;;  %v4494_v24 = vmov %v4410_v37 }
 0x211   : >> { %v1559_v15 = vadd.f32 %v1558_v26, %v1470_v28  ;;  %v4496_v26 = vmov %v4408_v33  ;;  %v4498_v28 = vmov %v4406_v41 }
 0x213   : >> { %v4160_v1 = vadd.f32 %v4459_v7, %v1559_v15   ;;  %v4477_v7 = vmov %v4437_v39  ;;  %v4485_v15 = vmov %v4419_v49 }
 0x214   : >> { %v1382_v21 = vpop.f32.mrf.mxu2  ;;  %v4511_v5 = vld [vmem:[#allocation42_spill] sm:$0xff] (%p4169_p1) }
 0x215   : >> { %4460 = vst [vmem:[#allocation43_spill] sm:$0xff] %v4160_v1  ;;  %v1383_v14 = vadd.f32 %v1382_v21, %v1294_v45  ;;  %v1471_v47 = vpop.f32.mrf.mxu3  ;;  %v4469_v55 = vmov %v4160_v1  ;;  %v4491_v21 = vmov %v4413_v40  ;;  %v3018_v45 = vld [vmem:[#allocation7] ss:$0 sm:$0xff] (%p4169_p1) }
 0x216   : >> { %v4470_v1 = vmov %v4469_v55  ;;  %v4504_v55 = vld [vmem:[#allocation35_spill] sm:$0xff] (%p4169_p1)  ;;  %v1601_v35 = vadd.f32 (%p4169_p1), %v3018_v45, %v4405_v62  ;;  %v1602_v48 = vadd.f32 (%p4169_p1), %v3018_v45, %v4406_v41  ;;  %v1603_v61 = vadd.f32 (%p4169_p1), %v3018_v45, %v4407_v52 }
 0x217   : >> { %v1472_v10 = vadd.f32 %v1471_v47, %v1383_v14  ;;  %v4484_v14 = vmov %v4420_v54  ;;  %v4503_v47 = vld [vmem:[#allocation34_spill] sm:$0xff] (%p4169_p1)  ;;  %v1600_v50 = vadd.f32 (%p4169_p1), %v3018_v45, %v4504_v55  ;;  %v1604_v38 = vadd.f32 (%p4169_p1), %v3018_v45, %v4408_v33 }
 0x218   : > { %v1605_v31 = vadd.f32 (%p4169_p1), %v3018_v45, %v4409_v58  ;;  %v1606_v39 = vadd.f32 (%p4169_p1), %v3018_v45, %v4410_v37  ;;  %v2551_v9 = vpack.c.bf16 (%p4169_p1), %v1602_v48, %v1601_v35  ;;  %v1607_v25 = vadd.f32 (%p4169_p1), %v3018_v45, %v4411_v36  ;;  %v4507_v35 = vld [vmem:[#allocation38_spill] sm:$0xff] (%p4169_p1) }
 0x219   : >> { %v1561_v18 = vadd.f32 %v1560_v23, %v1472_v10  ;;  %v4480_v10 = vmov %v4426_v43  ;;  %v4493_v23 = vmov %v4411_v36  ;;  %v1608_v2 = vadd.f32 (%p4169_p1), %v3018_v45, %v4412_v56 }
 0x21a   : > { %242 = sbr.rel (!%p4169_p1) target bundleno = 54 (0x36), region = 94  ;;  %v2556_v29 = vpack.c.bf16 (%p4169_p1), %v1604_v38, %v1603_v61  ;;  %v2561_v62 = vpack.c.bf16 (%p4169_p1), %v1606_v39, %v1605_v31  ;;  %v1609_v41 = vadd.f32 (%p4169_p1), %v3018_v45, %v4413_v40  ;;  %v1610_v52 = vadd.f32 (%p4169_p1), %v3018_v45, %v4414_v44  ;;  %2623 = vst [vmem:[%s3600_s24 + $0x8] sm:$0xff] (%p4169_p1), %v2551_v9   ;;  %v4506_v61 = vld [vmem:[#allocation37_spill] sm:$0xff] (%p4169_p1) }
 0x21b   : >> { %v4164_v0 = vadd.f32 %v4463_v13, %v1561_v18   ;;  %v4483_v13 = vmov %v4421_v34  ;;  %v4488_v18 = vmov %v4416_v46  ;;  %v2566_v33 = vpack.c.bf16 (%p4169_p1), %v1608_v2, %v1607_v25 }
 0x21c   : > { %v1611_v58 = vadd.f32 (%p4169_p1), %v3018_v45, %v4415_v63  ;;  %v1612_v37 = vadd.f32 (%p4169_p1), %v3018_v45, %v4416_v46  ;;  %v1613_v48 = vadd.f32 (%p4169_p1), %v3018_v45, %v4417_v59  ;;  %v1614_v36 = vadd.f32 (%p4169_p1), %v3018_v45, %v4418_v32  ;;  %2624 = vst [vmem:[%s3600_s24 + $0x10] sm:$0xff] (%p4169_p1), %v2556_v29   ;;  %v4512_v4 = vld [vmem:[#allocation43_spill] sm:$0xff] (%p4169_p1) }
 0x21d   : >> { %4464 = vst [vmem:[#allocation44_spill] sm:$0xff] %v4164_v0  ;;  %v4467_v53 = vmov %v4164_v0  ;;  %v1615_v56 = vadd.f32 (%p4169_p1), %v3018_v45, %v4419_v49  ;;  %v1616_v40 = vadd.f32 (%p4169_p1), %v3018_v45, %v4420_v54  ;;  %v1618_v63 = vadd.f32 (%p4169_p1), %v3018_v45, %v4422_v42  ;;  %v4505_v54 = vld [vmem:[#allocation36_spill] sm:$0xff] (%p4169_p1) }
 0x21e   : >> { %v4468_v0 = vmov %v4467_v53  ;;  %v1599_v53 = vadd.f32 (%p4169_p1), %v3018_v45, %v4503_v47  ;;  %v2576_v44 = vpack.c.bf16 (%p4169_p1), %v1612_v37, %v1611_v58  ;;  %v1619_v46 = vadd.f32 (%p4169_p1), %v3018_v45, %v4423_v60  ;;  %2625 = vst [vmem:[%s3600_s24 + $0x18] sm:$0xff] (%p4169_p1), %v2561_v62  }
 0x21f   : > { %v2581_v59 = vpack.c.bf16 %v1614_v36, %v1613_v48  ;;  %v1620_v39 = vadd.f32 %v3018_v45, %v4426_v43  ;;  %v1621_v32 = vadd.f32 %v3018_v45, %v4429_v57  ;;  %2626 = vst [vmem:[%s3600_s24 + $0x20] sm:$0xff] %v2566_v33   ;;  %v2586_v49 = vpack.c.bf16 %v1616_v40, %v1615_v56  ;;  %v4509_v43 = vld [vmem:[#allocation40_spill] sm:$0xff] }
 0x220   : > { %v2546_v51 = vpack.c.bf16 %v1600_v50, %v1599_v53  ;;  %v2571_v53 = vpack.c.bf16 %v1610_v52, %v1609_v41  ;;  %v1622_v38 = vadd.f32 %v3018_v45, %v4505_v54  ;;  %v1624_v42 = vadd.f32 %v3018_v45, %v4507_v35  ;;  %2628 = vst [vmem:[%s3600_s24 + $0x30] sm:$0xff] %v2576_v44  }
 0x221   : > { %v1625_v20 = vadd.f32 %v3018_v45, %v4508_v27  ;;  %v1626_v17 = vadd.f32 %v3018_v45, %v4509_v43  ;;  %v2596_v57 = vpack.c.bf16 %v1620_v39, %v1619_v46  ;;  %v1627_v8 = vadd.f32 %v3018_v45, %v4510_v12  ;;  %2629 = vst [vmem:[%s3600_s24 + $0x38] sm:$0xff] %v2581_v59  }
 0x222   : > { %2547 = vst [vmem:[%s3600_s24] sm:$0xff] %v2546_v51   ;;  %v1617_v51 = vadd.f32 %v3018_v45, %v4421_v34  ;;  %v1623_v34 = vadd.f32 %v3018_v45, %v4506_v61  ;;  %v1628_v6 = vadd.f32 %v3018_v45, %v4511_v5  ;;  %v2601_v0 = vpack.c.bf16 %v1622_v38, %v1621_v32 }
 0x223   : > { %2627 = vst [vmem:[%s3600_s24 + $0x28] sm:$0xff] %v2571_v53   ;;  %v1629_v22 = vadd.f32 %v3018_v45, %v4512_v4  ;;  %v2611_v11 = vpack.c.bf16 %v1626_v17, %v1625_v20 }
 0x224   : > { %v2591_v60 = vpack.c.bf16 %v1618_v63, %v1617_v51  ;;  %v4513_v50 = vld [vmem:[#allocation44_spill] sm:$0xff]  ;;  %2630 = vst [vmem:[%s3600_s24 + $0x40] sm:$0xff] %v2586_v49   ;;  %v2606_v16 = vpack.c.bf16 %v1624_v42, %v1623_v34  ;;  %v2616_v24 = vpack.c.bf16 %v1628_v6, %v1627_v8 }
 0x225   : > { %v1630_v1 = vadd.f32 %v3018_v45, %v4513_v50  ;;  %2632 = vst [vmem:[%s3600_s24 + $0x50] sm:$0xff] %v2596_v57  }
 0x226   : > { %2631 = vst [vmem:[%s3600_s24 + $0x48] sm:$0xff] %v2591_v60  }
 0x227   : > { %2633 = vst [vmem:[%s3600_s24 + $0x58] sm:$0xff] %v2601_v0   ;;  %v2621_v30 = vpack.c.bf16 %v1630_v1, %v1629_v22 }
 0x228   : > { %2634 = vst [vmem:[%s3600_s24 + $0x60] sm:$0xff] %v2606_v16  }
 0x229   : > { %2635 = vst [vmem:[%s3600_s24 + $0x68] sm:$0xff] %v2611_v11  }
 0x22a   : > { %2636 = vst [vmem:[%s3600_s24 + $0x70] sm:$0xff] %v2616_v24  }
 0x22b   : > { %2637 = vst [vmem:[%s3600_s24 + $0x78] sm:$0xff] %v2621_v30  }
 0x22c   : > { %3136 = shalt.err (!%p3133_p3)
}
 0x22d   : > { %s3467_s11 = smov 64   ;;  %s3468_s24 = smov 4  }
 0x22e   : > { %2675 = dma.vmem_to_hbm [thread:$0]  (%p3568_p7), %s1711_s25, 2048, %s1713_s29, %s1696_s27, %s3467_s11, %s3467_s11, %s3468_s24  }
 0x22f PF: > { %s1727_s21 = sand.u32 1, %s3307_s12   ;;  %p2689_p5 = pnand %p1926_p11, %p3538_p6 }
 0x230   : > { %s1728_s7 = scalar_lea.sflag [#allocation4], %s1727_s21 }
 0x231   : > { %p2690_p9 = pneg %p2689_p5 }
 0x233   : > { %3302 = dma.done.wait (%p2690_p9), %s1728_s7, 2048  }
 0x234   : > { %3304 = vsyncadd (%p2690_p9), %s1728_s7, 4294965248  ;;  %s20_s17 = sadd.s32 1, %s3327_s17   ;;  %s4514_s12 = smov %s3311_s13 }
 0x235   : > { %p17_p10 = scmp.ge.s32.totalorder %s20_s17, 4   ;;  %s4515_s13 = smov %s3315_s14 }
 0x236   : > { %s4516_s14 = smov %s3576_s26  ;;  %s4517_s15 = smov %s3323_s16 }
 0x237   : > { %s4518_s16 = smov %s4520_s10  ;;  %19 = sbr.rel (!%p17_p10) target bundleno = 7 (0x7), region = 105 }
 0x23c   :  { %1734 = vsyncpa [#allocation3], 1 }
 0x23d   :  { %1736 = vsyncpa [#allocation3 + $0x1], 1 }
 0x23e   :  { %1737 = vsyncpa [#allocation6], 1 }
 0x23f   :  { %1738 = vsyncpa [#allocation4], 1 }
 0x240   :  { %1740 = vsyncpa [#allocation4 + $0x1], 1 }

</bundles_post_ra>
